<compile_context>
chip_gen: v7x
topology: tpu7x:2x2x1
jax: 0.10.0
libtpu: 0.0.40
codegen_flags: <defaults>
</compile_context>

<pallas_src>
import functools

import jax
import jax.numpy as jnp
from jax.experimental import pallas as pl
from jax.experimental.pallas import tpu as pltpu


LANE = 128


def _round_up(v, m):
    return (v + m - 1) // m * m


def _midas_kernel(x_ref, w1_ref, ws_ref, bs_ref, o_ref, *, n_layers):
    """One batch-tile of the full MIDAS MLP forward pass (all matmuls on MXU).

    x_ref : (tile, D)            bf16   input rows (true feature width)
    w1_ref: (D, Hp)              bf16   first Linear, lane-padded output dim
    ws_ref: (n_layers-1, Hp, Hp) bf16   remaining Linears, lane-padded both dims
    bs_ref: (n_layers, Hp)       f32    all biases, lane-padded
    o_ref : (tile, Hp)           f32    lane-dense output (sliced to input_dim outside)
    """
    # ---- layer 0: Linear -> Dropout(identity at eval) -> ReLU ----
    acc = jnp.dot(x_ref[...], w1_ref[...], preferred_element_type=jnp.float32)
    h = jnp.maximum(acc + bs_ref[0:1, :], 0.0)        # f32, (tile, Hp)

    # ---- remaining encoder/decoder layers (unrolled; shapes are static) ----
    for k in range(1, n_layers):
        acc = jnp.dot(h.astype(jnp.bfloat16), ws_ref[k - 1],
                      preferred_element_type=jnp.float32)
        acc = acc + bs_ref[k:k + 1, :]
        if k < n_layers - 1:
            h = jnp.maximum(acc, 0.0)                 # hidden: ReLU
        else:
            h = acc                                   # output Linear: no ReLU

    # ---- MixedActivation: identity for 'num' columns ----
    # TODO(synk): per-column 'bin'/'cat'/'pos' activations of MixedActivation
    o_ref[...] = h.astype(o_ref.dtype)


def pack_midas_params(params):
    """Pad/pack per-layer (W, b) into lane-dense, consolidated kernel operands.

    params: list of (W, b) with W shaped (in, out) f32, b shaped (out,) or (1, out).
    Returns (w1 bf16 (D, Hp), ws bf16 (L-1, Hp, Hp), bs f32 (L, Hp), Hp).
    Zero padding keeps the math exact: padded weight rows/cols and bias lanes are 0,
    so padded activation lanes stay 0 through every ReLU.
    """
    n_layers = len(params)
    out_dims = [w.shape[1] for (w, _) in params]
    Hp = _round_up(max(out_dims), LANE)
    D = params[0][0].shape[0]

    w1 = jnp.zeros((D, Hp), jnp.float32).at[:, :out_dims[0]].set(params[0][0])
    ws = jnp.zeros((n_layers - 1, Hp, Hp), jnp.float32)
    bs = jnp.zeros((n_layers, Hp), jnp.float32)
    bs = bs.at[0, :out_dims[0]].set(params[0][1].reshape(-1))
    for k in range(1, n_layers):
        w, b = params[k]
        ws = ws.at[k - 1, :w.shape[0], :w.shape[1]].set(w)
        bs = bs.at[k, :w.shape[1]].set(b.reshape(-1))
    return w1.astype(jnp.bfloat16), ws.astype(jnp.bfloat16), bs, Hp


def midas_forward(x, params, *, batch_tile=256):
    """Run the MIDAS forward pass with a Pallas kernel tiled over the batch axis.

    x:      [B, input_dim] float32
    params: list of (W, b) with W already transposed to (in, out)
    """
    B, D = x.shape
    n_layers = len(params)
    out_dim = params[-1][0].shape[1]
    assert batch_tile % 128 == 0, "batch_tile should be a multiple of 128"

    w1, ws, bs, Hp = pack_midas_params(params)

    # bf16 input halves x HBM traffic and feeds the MXU at native rate.
    x_in = x.astype(jnp.bfloat16)
    B_pad = _round_up(B, batch_tile)
    if B_pad != B:
        x_in = jnp.pad(x_in, ((0, B_pad - B), (0, 0)))
    n_tiles = B_pad // batch_tile

    kernel = functools.partial(_midas_kernel, n_layers=n_layers)
    out = pl.pallas_call(
        kernel,
        out_shape=jax.ShapeDtypeStruct((B_pad, Hp), jnp.float32),
        grid_spec=pltpu.PrefetchScalarGridSpec(
            num_scalar_prefetch=0,
            grid=(n_tiles,),
            in_specs=[
                # x: tiled over batch; feature axis kept at true width (masked vld
                # on input is far cheaper than padding x in HBM).
                pl.BlockSpec((batch_tile, D), lambda i: (i, 0)),
                # weights/biases: full-array blocks, same block every grid step.
                pl.BlockSpec((D, Hp), lambda i: (0, 0)),
                pl.BlockSpec((n_layers - 1, Hp, Hp), lambda i: (0, 0, 0)),
                pl.BlockSpec((n_layers, Hp), lambda i: (0, 0)),
            ],
            # Lane-dense (width Hp = multiple of 128) output -> unmasked stores.
            out_specs=pl.BlockSpec((batch_tile, Hp), lambda i: (i, 0)),
        ),
        compiler_params=pltpu.CompilerParams(
            dimension_semantics=("parallel",)),
    )(x_in, w1, ws, bs)

    return out[:B, :out_dim]


def make_midas_params(key, input_dim, hidden_layers):
    """Deterministic parameter init matching MIDAS._build_model shapes.

    encoder: Linear(input_dim, h0), Linear(h0, h1), Linear(h1, h2)
    decoder: Linear(h2, h1), Linear(h1, h0), output Linear(h0, input_dim)
    Returned weights are pre-transposed to (in, out); biases are (out,).
    """
    dims = []
    prev = input_dim
    for h in hidden_layers:                       # encoder
        dims.append((prev, h))
        prev = h
    decode = list(reversed(hidden_layers))        # decoder
    for i in range(len(decode) - 1):
        dims.append((decode[i], decode[i + 1]))
    dims.append((decode[-1], input_dim))          # output layer

    params = []
    for (fan_in, fan_out) in dims:
        key, kw, kb = jax.random.split(key, 3)
        bound = 1.0 / jnp.sqrt(fan_in)            # torch.nn.Linear default init range
        w = jax.random.uniform(kw, (fan_in, fan_out), jnp.float32, -bound, bound)
        b = jax.random.uniform(kb, (fan_out,), jnp.float32, -bound, bound)
        params.append((w, b))
    return params


def midas_reference_f32(x, params):
    """Pure-f32 reference of the same forward pass."""
    h = x
    n = len(params)
    for idx, (w, b) in enumerate(params):
        h = h @ w + b.reshape(1, -1)
        if idx < n - 1:
            h = jnp.maximum(h, 0.0)
    return h


def midas_reference_packed(x, params):
    """Plain-JAX reference that mirrors the kernel math exactly (bf16 in, f32 acc)."""
    w1, ws, bs, _ = pack_midas_params(params)
    n_layers = len(params)
    out_dim = params[-1][0].shape[1]
    acc = jnp.dot(x.astype(jnp.bfloat16), w1, preferred_element_type=jnp.float32)
    h = jnp.maximum(acc + bs[0:1, :], 0.0)
    for k in range(1, n_layers):
        acc = jnp.dot(h.astype(jnp.bfloat16), ws[k - 1],
                      preferred_element_type=jnp.float32) + bs[k:k + 1, :]
        h = jnp.maximum(acc, 0.0) if k < n_layers - 1 else acc
    return h[:, :out_dim]


if __name__ == "__main__":
    key = jax.random.PRNGKey(0)

    # Tabular data, [batch, input_dim]; batch large enough that the grid has
    # multiple parallel tiles (v7x megacore) while staying small in absolute terms.
    batch = 1024
    input_dim = 12
    hidden_layers = [32, 16, 8]

    k_x, k_p = jax.random.split(key)
    x = jax.random.normal(k_x, (batch, input_dim), jnp.float32)
    params = make_midas_params(k_p, input_dim, hidden_layers)

    out = midas_forward(x, params, batch_tile=256)
    out = jax.block_until_ready(out)
    assert out.shape == (batch, input_dim), out.shape

    # Tight check vs. a plain-JAX replica of the kernel math (bf16 inputs, f32 acc).
    ref_packed = midas_reference_packed(x, params)
    assert jnp.allclose(out, ref_packed, atol=1e-3, rtol=1e-3), "mismatch vs packed ref"

    # Loose check vs. the pure-f32 reference (bf16 weight quantization error only).
    ref_f32 = midas_reference_f32(x, params)
    assert jnp.allclose(out, ref_f32, atol=1e-1, rtol=1e-1), "mismatch vs f32 ref"

    print("KERNEL_OK")
</pallas_src>

<mosaic_0001>
module attributes {stable_mosaic.version = 11 : i64} {
  func.func @_midas_kernel(%arg0: i32, %arg1: memref<256x12xbf16, #tpu.memory_space<vmem>>, %arg2: memref<12x128xbf16, #tpu.memory_space<vmem>>, %arg3: memref<5x128x128xbf16, #tpu.memory_space<vmem>>, %arg4: memref<6x128xf32, #tpu.memory_space<vmem>>, %arg5: memref<256x128xf32, #tpu.memory_space<vmem>>) attributes {dimension_semantics = [#tpu.dimension_semantics<parallel>], iteration_bounds = array<i64: 4>, scalar_prefetch = 0 : i64, scratch_operands = 0 : i64, tpu.core_type = #tpu.core_type<tc>, window_params = [{transform_indices = @transform_0, window_bounds = array<i64: 256, 12>}, {pipeline_mode = #tpu.pipeline_mode<synchronous>, transform_indices = @transform_1, window_bounds = array<i64: 12, 128>}, {pipeline_mode = #tpu.pipeline_mode<synchronous>, transform_indices = @transform_2, window_bounds = array<i64: 5, 128, 128>}, {pipeline_mode = #tpu.pipeline_mode<synchronous>, transform_indices = @transform_3, window_bounds = array<i64: 6, 128>}, {transform_indices = @transform_4, window_bounds = array<i64: 256, 128>}]} {
    %c0 = arith.constant 0 : index
    %c0_0 = arith.constant 0 : index
    %0 = vector.load %arg1[%c0, %c0_0] : memref<256x12xbf16, #tpu.memory_space<vmem>>, vector<256x12xbf16>
    %c0_1 = arith.constant 0 : index
    %c0_2 = arith.constant 0 : index
    %1 = vector.load %arg2[%c0_1, %c0_2] : memref<12x128xbf16, #tpu.memory_space<vmem>>, vector<12x128xbf16>
    %cst = arith.constant dense<0.000000e+00> : vector<256x128xf32>
    %2 = tpu.matmul %0, %1, %cst {dimension_numbers = #tpu.dot_dimension_numbers<[1], [0], [0], [1], [0, 0, 1, 1], [], []>} : vector<256x12xbf16>, vector<12x128xbf16>, vector<256x128xf32> -> vector<256x128xf32>
    %c0_3 = arith.constant 0 : index
    %c0_4 = arith.constant 0 : index
    %3 = vector.load %arg4[%c0_3, %c0_4] : memref<6x128xf32, #tpu.memory_space<vmem>>, vector<1x128xf32>
    %4 = vector.broadcast %3 : vector<1x128xf32> to vector<256x128xf32>
    %5 = arith.addf %2, %4 : vector<256x128xf32>
    %cst_5 = arith.constant 0.000000e+00 : f32
    %6 = vector.broadcast %cst_5 : f32 to vector<256x128xf32>
    %7 = arith.maximumf %5, %6 : vector<256x128xf32>
    %8 = arith.truncf %7 : vector<256x128xf32> to vector<256x128xbf16>
    %c0_6 = arith.constant 0 : index
    %c0_7 = arith.constant 0 : index
    %c0_8 = arith.constant 0 : index
    %9 = vector.load %arg3[%c0_6, %c0_7, %c0_8] : memref<5x128x128xbf16, #tpu.memory_space<vmem>>, vector<1x128x128xbf16>
    %10 = vector.shape_cast %9 : vector<1x128x128xbf16> to vector<128x128xbf16>
    %cst_9 = arith.constant dense<0.000000e+00> : vector<256x128xf32>
    %11 = tpu.matmul %8, %10, %cst_9 {dimension_numbers = #tpu.dot_dimension_numbers<[1], [0], [0], [1], [0, 0, 1, 1], [], []>} : vector<256x128xbf16>, vector<128x128xbf16>, vector<256x128xf32> -> vector<256x128xf32>
    %c1 = arith.constant 1 : index
    %c0_10 = arith.constant 0 : index
    %12 = vector.load %arg4[%c1, %c0_10] : memref<6x128xf32, #tpu.memory_space<vmem>>, vector<1x128xf32>
    %13 = vector.broadcast %12 : vector<1x128xf32> to vector<256x128xf32>
    %14 = arith.addf %11, %13 : vector<256x128xf32>
    %cst_11 = arith.constant 0.000000e+00 : f32
    %15 = vector.broadcast %cst_11 : f32 to vector<256x128xf32>
    %16 = arith.maximumf %14, %15 : vector<256x128xf32>
    %17 = arith.truncf %16 : vector<256x128xf32> to vector<256x128xbf16>
    %c1_12 = arith.constant 1 : index
    %c0_13 = arith.constant 0 : index
    %c0_14 = arith.constant 0 : index
    %18 = vector.load %arg3[%c1_12, %c0_13, %c0_14] : memref<5x128x128xbf16, #tpu.memory_space<vmem>>, vector<1x128x128xbf16>
    %19 = vector.shape_cast %18 : vector<1x128x128xbf16> to vector<128x128xbf16>
    %cst_15 = arith.constant dense<0.000000e+00> : vector<256x128xf32>
    %20 = tpu.matmul %17, %19, %cst_15 {dimension_numbers = #tpu.dot_dimension_numbers<[1], [0], [0], [1], [0, 0, 1, 1], [], []>} : vector<256x128xbf16>, vector<128x128xbf16>, vector<256x128xf32> -> vector<256x128xf32>
    %c2 = arith.constant 2 : index
    %c0_16 = arith.constant 0 : index
    %21 = vector.load %arg4[%c2, %c0_16] : memref<6x128xf32, #tpu.memory_space<vmem>>, vector<1x128xf32>
    %22 = vector.broadcast %21 : vector<1x128xf32> to vector<256x128xf32>
    %23 = arith.addf %20, %22 : vector<256x128xf32>
    %cst_17 = arith.constant 0.000000e+00 : f32
    %24 = vector.broadcast %cst_17 : f32 to vector<256x128xf32>
    %25 = arith.maximumf %23, %24 : vector<256x128xf32>
    %26 = arith.truncf %25 : vector<256x128xf32> to vector<256x128xbf16>
    %c2_18 = arith.constant 2 : index
    %c0_19 = arith.constant 0 : index
    %c0_20 = arith.constant 0 : index
    %27 = vector.load %arg3[%c2_18, %c0_19, %c0_20] : memref<5x128x128xbf16, #tpu.memory_space<vmem>>, vector<1x128x128xbf16>
    %28 = vector.shape_cast %27 : vector<1x128x128xbf16> to vector<128x128xbf16>
    %cst_21 = arith.constant dense<0.000000e+00> : vector<256x128xf32>
    %29 = tpu.matmul %26, %28, %cst_21 {dimension_numbers = #tpu.dot_dimension_numbers<[1], [0], [0], [1], [0, 0, 1, 1], [], []>} : vector<256x128xbf16>, vector<128x128xbf16>, vector<256x128xf32> -> vector<256x128xf32>
    %c3 = arith.constant 3 : index
    %c0_22 = arith.constant 0 : index
    %30 = vector.load %arg4[%c3, %c0_22] : memref<6x128xf32, #tpu.memory_space<vmem>>, vector<1x128xf32>
    %31 = vector.broadcast %30 : vector<1x128xf32> to vector<256x128xf32>
    %32 = arith.addf %29, %31 : vector<256x128xf32>
    %cst_23 = arith.constant 0.000000e+00 : f32
    %33 = vector.broadcast %cst_23 : f32 to vector<256x128xf32>
    %34 = arith.maximumf %32, %33 : vector<256x128xf32>
    %35 = arith.truncf %34 : vector<256x128xf32> to vector<256x128xbf16>
    %c3_24 = arith.constant 3 : index
    %c0_25 = arith.constant 0 : index
    %c0_26 = arith.constant 0 : index
    %36 = vector.load %arg3[%c3_24, %c0_25, %c0_26] : memref<5x128x128xbf16, #tpu.memory_space<vmem>>, vector<1x128x128xbf16>
    %37 = vector.shape_cast %36 : vector<1x128x128xbf16> to vector<128x128xbf16>
    %cst_27 = arith.constant dense<0.000000e+00> : vector<256x128xf32>
    %38 = tpu.matmul %35, %37, %cst_27 {dimension_numbers = #tpu.dot_dimension_numbers<[1], [0], [0], [1], [0, 0, 1, 1], [], []>} : vector<256x128xbf16>, vector<128x128xbf16>, vector<256x128xf32> -> vector<256x128xf32>
    %c4 = arith.constant 4 : index
    %c0_28 = arith.constant 0 : index
    %39 = vector.load %arg4[%c4, %c0_28] : memref<6x128xf32, #tpu.memory_space<vmem>>, vector<1x128xf32>
    %40 = vector.broadcast %39 : vector<1x128xf32> to vector<256x128xf32>
    %41 = arith.addf %38, %40 : vector<256x128xf32>
    %cst_29 = arith.constant 0.000000e+00 : f32
    %42 = vector.broadcast %cst_29 : f32 to vector<256x128xf32>
    %43 = arith.maximumf %41, %42 : vector<256x128xf32>
    %44 = arith.truncf %43 : vector<256x128xf32> to vector<256x128xbf16>
    %c4_30 = arith.constant 4 : index
    %c0_31 = arith.constant 0 : index
    %c0_32 = arith.constant 0 : index
    %45 = vector.load %arg3[%c4_30, %c0_31, %c0_32] : memref<5x128x128xbf16, #tpu.memory_space<vmem>>, vector<1x128x128xbf16>
    %46 = vector.shape_cast %45 : vector<1x128x128xbf16> to vector<128x128xbf16>
    %cst_33 = arith.constant dense<0.000000e+00> : vector<256x128xf32>
    %47 = tpu.matmul %44, %46, %cst_33 {dimension_numbers = #tpu.dot_dimension_numbers<[1], [0], [0], [1], [0, 0, 1, 1], [], []>} : vector<256x128xbf16>, vector<128x128xbf16>, vector<256x128xf32> -> vector<256x128xf32>
    %c5 = arith.constant 5 : index
    %c0_34 = arith.constant 0 : index
    %48 = vector.load %arg4[%c5, %c0_34] : memref<6x128xf32, #tpu.memory_space<vmem>>, vector<1x128xf32>
    %49 = vector.broadcast %48 : vector<1x128xf32> to vector<256x128xf32>
    %50 = arith.addf %47, %49 : vector<256x128xf32>
    %c0_35 = arith.constant 0 : index
    %c0_36 = arith.constant 0 : index
    %51 = vector.load %arg5[%c0_35, %c0_36] : memref<256x128xf32, #tpu.memory_space<vmem>>, vector<256x128xf32>
    tpu.vector_store %arg5[%c0_35, %c0_36], %50 {strides = array<i32>} : memref<256x128xf32, #tpu.memory_space<vmem>>, vector<256x128xf32>,
    return
  }
  func.func @transform_0(%arg0: i32) -> (i32, i32) {
    %c0_i32 = arith.constant 0 : i32
    %c0_i32_0 = arith.constant 0 : i32
    return %arg0, %c0_i32 : i32, i32
  }
  func.func @transform_1(%arg0: i32) -> (i32, i32) {
    %c0_i32 = arith.constant 0 : i32
    %c0_i32_0 = arith.constant 0 : i32
    %c0_i32_1 = arith.constant 0 : i32
    return %c0_i32, %c0_i32_0 : i32, i32
  }
  func.func @transform_2(%arg0: i32) -> (i32, i32, i32) {
    %c0_i32 = arith.constant 0 : i32
    %c0_i32_0 = arith.constant 0 : i32
    %c0_i32_1 = arith.constant 0 : i32
    %c0_i32_2 = arith.constant 0 : i32
    return %c0_i32, %c0_i32_0, %c0_i32_1 : i32, i32, i32
  }
  func.func @transform_3(%arg0: i32) -> (i32, i32) {
    %c0_i32 = arith.constant 0 : i32
    %c0_i32_0 = arith.constant 0 : i32
    %c0_i32_1 = arith.constant 0 : i32
    return %c0_i32, %c0_i32_0 : i32, i32
  }
  func.func @transform_4(%arg0: i32) -> (i32, i32) {
    %c0_i32 = arith.constant 0 : i32
    %c0_i32_0 = arith.constant 0 : i32
    return %arg0, %c0_i32 : i32, i32
  }
}

</mosaic_0001>

<bundles_post_ra>
// kernel: tpu_custom_call.1
= control target key start
LH: loop header
LB: loop body
LE: loop exit
PB: predicated region body
PF: predicated region fallthrough
CT: control target
= control target key end

     0   :  { %9 = vsyncpa [#allocation3], 0  ;;  %s3352_s0 = inlined_call_operand.vmem [shape: bf16[1024,12], index: 0, kind: input, shape index: {}]   ;;  %s3353_s1 = inlined_call_operand.vmem [shape: bf16[12,128], index: 1, kind: input, shape index: {}]   ;;  %s3354_s2 = inlined_call_operand.vmem [shape: bf16[5,128,128], index: 2, kind: input, shape index: {}]   ;;  %s3355_s3 = inlined_call_operand.vmem [shape: f32[6,128], index: 3, kind: input, shape index: {}]   ;;  %s3356_s4 = inlined_call_operand.hbm [shape: f32[1024,128], index: 4, kind: output, shape index: {}]  }
   0x1   :  { %11 = vsyncpa [#allocation3 + $0x1], 0  ;;  %s2814_s15 = smov 0   ;;  %s2816_s16 = smov 0  }
   0x2   :  { %s2818_s17 = smov 0   ;;  %s2820_s18 = smov 0  }
   0x3 LB: > { %s2835_s19 = sadd.s32 4294967295, %s2784_s18   ;;  %s2040_s20 = sadd.s32 4294967294, %s2784_s18   ;;  %s2784_s18 = sphi %s2820_s18, %s3362_s18   ;;  %s2780_s17 = sphi %s2818_s17, %s3361_s17   ;;  %s2776_s16 = sphi %s2816_s16, %s3360_s16   ;;  %s2772_s15 = sphi %s2814_s15, %s3359_s15  }
   0x4   : > { %s2839_s21 = sadd.s32 1, %s2784_s18   ;;  %s113_s22 = sadd.s32 1, %s2780_s17 }
   0x5   : > { %s110_s23 = ssub.s32 %s2784_s18, %s2839_s21  ;;  %p123_p0 = scmp.ne.s32.totalorder %s2780_s17, %s2776_s16 }
   0x6   : > { %p111_p1 = scmp.eq.s32.totalorder %s110_s23, 0  ;;  %p124_p2 = scmp.eq.s32.totalorder %s2835_s19, 3 }
   0x7   : > { %p129_p3 = scmp.ne.s32.totalorder %s2776_s16, %s2772_s15  ;;  %p130_p4 = scmp.eq.s32.totalorder %s2040_s20, 3 }
   0x8   : > { %s2850_s24 = scalar_select %p111_p1, %s2780_s17, %s113_s22  }
   0x9   : > { %p2852_p5 = por %p124_p2, %p123_p0  ;;  %p2856_p6 = por %p130_p4, %p129_p3 }
   0xa   : > { %p2043_p7 = scmp.ge.s32.totalorder %s2784_s18, 1  ;;  %p166_p8 = scmp.lt.s32.totalorder %s2784_s18, 5 }
   0xc   : > { %p167_p9 = pnand %p2043_p7, %p166_p8 }
   0xd   : > { %v2665_v0 = vld [vmem:[%s3353_s1] sm:$0x3f] (!%p167_p9)   ;;  %vm373_vm0 = vcmask (!%p167_p9), 1045504   ;;  %s2045_s29 = sshll.u32 (!%p167_p9), %s2835_s19, 5  ;;  %v2683_v3 = vld [vmem:[%s3354_s2 + $0x8] sm:$0xff] (!%p167_p9)   ;;  %v2684_v4 = vld [vmem:[%s3354_s2 + $0x10] sm:$0xff] (!%p167_p9)  }
   0xe   : > { %170 = sbr.rel (%p167_p9) target bundleno = 1424 (0x590), region = 36  ;;  %v2682_v1 = vld [vmem:[%s3354_s2] sm:$0xff] (!%p167_p9)   ;;  %2623 = vmatprep.subr.msk.bf16.mxu0 (!%p167_p9), %vm373_vm0, %v2665_v0  ;;  %v375_v2 = vsel (!%p167_p9), %vm373_vm0, %v2665_v0, 0  ;;  %p193_p10 = scmp.lt.s32.totalorder (!%p167_p9), %s2045_s29, 127  ;;  %vm324_vm1 = vcmask (!%p167_p9), 97280   ;;  %v2685_v5 = vld [vmem:[%s3354_s2 + $0x18] sm:$0xff] (!%p167_p9)  }
   0xf   : > { %2334 = vmatpush3.bf16.msra.mxu0 (!%p167_p9), %v375_v2  ;;  %2367 = vmatprep.subr.bf16.mxu1 (!%p167_p9), %v2682_v1  ;;  %v2686_v9 = vld [vmem:[%s3354_s2 + $0x20] sm:$0xff] (!%p167_p9)   ;;  %v2687_v12 = vld [vmem:[%s3354_s2 + $0x28] sm:$0xff] (!%p167_p9)   ;;  %v2688_v24 = vld [vmem:[%s3354_s2 + $0x30] sm:$0xff] (!%p167_p9)   ;;  %s2195_s27 = sshll.u32 (!%p167_p9), %s2835_s19, 12  ;;  %s2786_s7 = smov (!%p167_p9), [#allocation2]  }
  0x10   : > { %2368 = vmatpush3.bf16.msra.mxu1 (!%p167_p9), %v2682_v1  ;;  %v2689_v25 = vld [vmem:[%s3354_s2 + $0x38] sm:$0xff] (!%p167_p9)   ;;  %v2690_v26 = vld [vmem:[%s3354_s2 + $0x40] sm:$0xff] (!%p167_p9)   ;;  %v2691_v27 = vld [vmem:[%s3354_s2 + $0x48] sm:$0xff] (!%p167_p9)   ;;  %s3301_s5 = scalar_lea.hbm (!%p167_p9), %s3356_s4, %s2195_s27  ;;  %s2726_s8 = sshll.u32 (!%p167_p9), %s2786_s7, 4  ;;  %s2727_s8 = int_to_ptr.vmem [resolvable:$false] %s2726_s8 }
  0x11   : > { %2369 = vmatprep.subr.bf16.mxu1 (!%p167_p9), %v2683_v3  ;;  %2415 = vmatprep.subr.bf16.mxu0 (!%p167_p9), %v2690_v26  ;;  %v2692_v28 = vld [vmem:[%s3354_s2 + $0x50] sm:$0xff] (!%p167_p9)   ;;  %v2693_v29 = vld [vmem:[%s3354_s2 + $0x58] sm:$0xff] (!%p167_p9)   ;;  %v2694_v30 = vld [vmem:[%s3354_s2 + $0x60] sm:$0xff] (!%p167_p9)   ;;  %s2728_s9 = scalar_lea.vmem (!%p167_p9), %s2727_s8, 8192 }
  0x12   : > { %v2695_v31 = vld [vmem:[%s3354_s2 + $0x68] sm:$0xff] (!%p167_p9)   ;;  %v2696_v32 = vld [vmem:[%s3354_s2 + $0x70] sm:$0xff] (!%p167_p9)   ;;  %v2951_v33 = vld [vmem:[%s3355_s3] ss:$0 sm:$0xff] (!%p167_p9) }
  0x14   : > { %2370 = vmatpush3.bf16.msra.mxu1 (!%p167_p9), %v2683_v3 }
  0x15   : > { %s3364_s29 = smov (!%p193_p10, %s2045_s29), 127  ;;  %2371 = vmatprep.subr.bf16.mxu1 %v2684_v4 }
  0x16   : > { %s2046_s10 = sshll.u32 %s3364_s29, 2 }
  0x17   : > { %s2878_s13 = scalar_lea.vmem %s3352_s0, %s2046_s10 }
  0x18   : > { %v2666_v6 = vld [vmem:[%s2878_s13] sm:$0xff]   ;;  %v2667_v7 = vld [vmem:[%s2878_s13 + $0x8] sm:$0xff]   ;;  %v2668_v8 = vld [vmem:[%s2878_s13 + $0x10] sm:$0xff]   ;;  %2372 = vmatpush3.bf16.msra.mxu1 %v2684_v4 }
  0x19   : > { %2335 = vmatprep.mubr.msk.bf16.mxu0 %vm324_vm1, %v2666_v6  ;;  %2373 = vmatprep.subr.bf16.mxu1 %v2685_v5  ;;  %v2669_v10 = vld [vmem:[%s2878_s13 + $0x18] sm:$0xff]   ;;  %v2670_v11 = vld [vmem:[%s2878_s13 + $0x20] sm:$0xff]   ;;  %v2671_v13 = vld [vmem:[%s2878_s13 + $0x28] sm:$0xff]  }
  0x1a   : > { %2336 = vmatmul.mubr.msk.bf16.vlgmr.msra.gmra.mrb[0].mxu0 %vm324_vm1, %v2667_v7  ;;  %v2672_v14 = vld [vmem:[%s2878_s13 + $0x30] sm:$0xff]   ;;  %v2673_v15 = vld [vmem:[%s2878_s13 + $0x38] sm:$0xff]   ;;  %v2674_v16 = vld [vmem:[%s2878_s13 + $0x40] sm:$0xff]  }
  0x1b   : > { %2339 = vmatprep.mubr.msk.bf16.mxu0 %vm324_vm1, %v2668_v8  ;;  %v2675_v17 = vld [vmem:[%s2878_s13 + $0x48] sm:$0xff]   ;;  %v2676_v18 = vld [vmem:[%s2878_s13 + $0x50] sm:$0xff]   ;;  %v2677_v19 = vld [vmem:[%s2878_s13 + $0x58] sm:$0xff]   ;;  %2416 = vmatpush3.bf16.msra.mxu0 %v2690_v26 }
  0x1c   : > { %2374 = vmatpush3.bf16.msra.mxu1 %v2685_v5  ;;  %v2678_v20 = vld [vmem:[%s2878_s13 + $0x60] sm:$0xff]   ;;  %v2679_v21 = vld [vmem:[%s2878_s13 + $0x68] sm:$0xff]   ;;  %v2680_v22 = vld [vmem:[%s2878_s13 + $0x70] sm:$0xff]   ;;  %2417 = vmatprep.subr.bf16.mxu0 %v2691_v27 }
  0x1d   : > { %2375 = vmatprep.subr.bf16.mxu1 %v2686_v9  ;;  %v2681_v23 = vld [vmem:[%s2878_s13 + $0x78] sm:$0xff]   ;;  %s189_s13 = sand.u32 1, %s2776_s16  }
  0x1e   : > { %s2044_s14 = sshll.u32 %s189_s13, 8  ;;  %s3311_s19 = scalar_lea.sflag [#allocation3], %s189_s13 }
  0x1f   : > { %2418 = vmatpush3.bf16.msra.mxu0 %v2691_v27  ;;  %s3236_s23 = scalar_lea.vmem [#allocation2], %s2044_s14 }
  0x20   : > { %2376 = vmatpush3.bf16.msra.mxu1 %v2686_v9  ;;  %2419 = vmatprep.subr.bf16.mxu0 %v2692_v28  ;;  %s1978_s28 = sshll.u32 %s3236_s23, 4  ;;  %s3303_s28 = int_to_ptr.vmem [resolvable:$true] %s1978_s28 }
  0x21   : > { %2377 = vmatprep.subr.bf16.mxu1 %v2687_v12  ;;  %s2722_s6 = scalar_lea.vmem %s3303_s28, 4096  ;;  %p2729_p0 = scmp.lt.s32.totalorder %s3303_s28, %s2727_s8 }
  0x22   : > { %2340 = vmatmul.mubr.msk.bf16.gmra.mrb[4].mxu0 %vm324_vm1, %v2669_v10  ;;  %p2723_p11 = scmp.ne.s32.totalorder %s3303_s28, %s2722_s6  ;;  %p2730_p1 = scmp.lt.s32.totalorder %s2728_s9, %s2722_s6 }
  0x23   : > { %2343 = vmatprep.mubr.msk.bf16.mxu0 %vm324_vm1, %v2670_v11  ;;  %2420 = vmatpush3.bf16.msra.mxu0 %v2692_v28 }
  0x24   : > { %2378 = vmatpush3.bf16.msra.mxu1 %v2687_v12  ;;  %2421 = vmatprep.subr.bf16.mxu0 %v2693_v29  ;;  %p2724_p12 = pnand %p2723_p11, %p2852_p5  ;;  %p2731_p2 = por %p2730_p1, %p2729_p0 }
  0x25   : > { %2379 = vmatprep.subr.bf16.mxu1 %v2688_v24 }
  0x26   : > { %p2725_p13 = pneg %p2724_p12 }
  0x27   : > { %2422 = vmatpush3.bf16.msra.mxu0 %v2693_v29 }
  0x28   : > { %2380 = vmatpush3.bf16.msra.mxu1 %v2688_v24  ;;  %2423 = vmatprep.subr.bf16.mxu0 %v2694_v30  ;;  %p2732_p3 = pnand %p2731_p2, %p2725_p13 }
  0x29   : > { %2381 = vmatprep.subr.bf16.mxu1 %v2689_v25 }
  0x2a   : > { %2344 = vmatmul.mubr.msk.bf16.gmra.mrb[8].mxu0 %vm324_vm1, %v2671_v13 }
  0x2b   : > { %2347 = vmatprep.mubr.msk.bf16.mxu0 %vm324_vm1, %v2672_v14  ;;  %2424 = vmatpush3.bf16.msra.mxu0 %v2694_v30 }
  0x2c   : > { %2382 = vmatpush3.bf16.msra.mxu1 %v2689_v25  ;;  %2425 = vmatprep.subr.bf16.mxu0 %v2695_v31 }
  0x2f   : > { %2426 = vmatpush3.bf16.msra.mxu0 %v2695_v31 }
  0x30   : > { %2427 = vmatprep.subr.bf16.mxu0 %v2696_v32 }
  0x32   : > { %2348 = vmatmul.mubr.msk.bf16.gmra.mrb[12].mxu0 %vm324_vm1, %v2673_v15 }
  0x33   : > { %2351 = vmatprep.mubr.msk.bf16.mxu0 %vm324_vm1, %v2674_v16  ;;  %2428 = vmatpush3.bf16.msra.mxu0 %v2696_v32 }
  0x3a   : > { %2352 = vmatmul.mubr.msk.bf16.gmra.mrb[16].mxu0 %vm324_vm1, %v2675_v17 }
  0x3b   : > { %2355 = vmatprep.mubr.msk.bf16.mxu0 %vm324_vm1, %v2676_v18 }
  0x42   : > { %2356 = vmatmul.mubr.msk.bf16.gmra.mrb[20].mxu0 %vm324_vm1, %v2677_v19 }
  0x43   : > { %2359 = vmatprep.mubr.msk.bf16.mxu0 %vm324_vm1, %v2678_v20 }
  0x4a   : > { %2360 = vmatmul.mubr.msk.bf16.gmra.mrb[24].mxu0 %vm324_vm1, %v2679_v21 }
  0x4b   : > { %2363 = vmatprep.mubr.msk.bf16.mxu0 %vm324_vm1, %v2680_v22 }
  0x52   : > { %2364 = vmatmul.mubr.msk.bf16.gmra.mrb[28].mxu0 %vm324_vm1, %v2681_v23 }
  0xed   : > { %v2337_v34 = vpop.f32.mrb[0].mxu0 }
  0xee   : > { %v420_v35 = vadd.f32 %v2337_v34, %v2951_v33  ;;  %v411_v36 = vpop.f32.mrb[1].mxu0 }
  0xef   : > { %v412_v37 = vadd.f32 %v2951_v33, %v411_v36  ;;  %v2338_v38 = vpop.f32.mrb[2].mxu0 }
  0xf0   : > { %v423_v39 = vadd.f32 %v2338_v38, %v2951_v33  ;;  %v414_v40 = vpop.f32.mrb[3].mxu0  ;;  %v540_v42 = vmax.f32 %v420_v35, 0.0 }
  0xf1   : > { %v415_v41 = vadd.f32 %v2951_v33, %v414_v40  ;;  %v538_v44 = vmax.f32 %v412_v37, 0.0 }
  0xf2   : > { %v541_v43 = vmax.f32 %v423_v39, 0.0 }
  0xf3   : > { %v539_v45 = vmax.f32 %v415_v41, 0.0 }
  0xf4   : > { %v571_v46 = vpack.c.bf16 %v541_v43, %v540_v42 }
  0xf5   : > { %v2341_v47 = vpop.f32.mrb[4].mxu0  ;;  %v570_v48 = vpack.c.bf16 %v539_v45, %v538_v44 }
  0xf6   : > { %v436_v49 = vadd.f32 %v2341_v47, %v2951_v33  ;;  %v427_v50 = vpop.f32.mrb[5].mxu0 }
  0xf7   : > { %v428_v51 = vadd.f32 %v2951_v33, %v427_v50  ;;  %v2342_v52 = vpop.f32.mrb[6].mxu0  ;;  %2383 = vmatprep.mubr.bf16.mxu1 %v570_v48 }
  0xf8   : > { %v439_v53 = vadd.f32 %v2342_v52, %v2951_v33  ;;  %v430_v54 = vpop.f32.mrb[7].mxu0  ;;  %2384 = vmatmul.mubr.bf16.vlgmr.msra.gmra.mrb[0].mxu1 %v571_v46  ;;  %v544_v56 = vmax.f32 %v436_v49, 0.0 }
  0xf9   : > { %v431_v55 = vadd.f32 %v2951_v33, %v430_v54  ;;  %v542_v58 = vmax.f32 %v428_v51, 0.0 }
  0xfa   : > { %v545_v57 = vmax.f32 %v439_v53, 0.0 }
  0xfb   : > { %v543_v59 = vmax.f32 %v431_v55, 0.0 }
  0xfc   : > { %v573_v60 = vpack.c.bf16 %v545_v57, %v544_v56 }
  0xfd   : > { %v572_v61 = vpack.c.bf16 %v543_v59, %v542_v58  ;;  %v2345_v62 = vpop.f32.mrb[8].mxu0 }
  0xfe   : > { %v452_v63 = vadd.f32 %v2345_v62, %v2951_v33  ;;  %v443_v0 = vpop.f32.mrb[9].mxu0 }
  0xff   : > { %v444_v1 = vadd.f32 %v2951_v33, %v443_v0  ;;  %v2346_v2 = vpop.f32.mrb[10].mxu0  ;;  %2387 = vmatprep.mubr.bf16.mxu1 %v572_v61 }
 0x100   : > { %v455_v3 = vadd.f32 %v2346_v2, %v2951_v33  ;;  %v446_v4 = vpop.f32.mrb[11].mxu0  ;;  %2388 = vmatmul.mubr.bf16.gmra.mrb[4].mxu1 %v573_v60  ;;  %v548_v6 = vmax.f32 %v452_v63, 0.0 }
 0x101   : > { %v447_v5 = vadd.f32 %v2951_v33, %v446_v4  ;;  %v546_v8 = vmax.f32 %v444_v1, 0.0 }
 0x102   : > { %v549_v7 = vmax.f32 %v455_v3, 0.0 }
 0x103   : > { %v547_v9 = vmax.f32 %v447_v5, 0.0 }
 0x104   : > { %v575_v10 = vpack.c.bf16 %v549_v7, %v548_v6 }
 0x105   : > { %v574_v11 = vpack.c.bf16 %v547_v9, %v546_v8  ;;  %v2349_v12 = vpop.f32.mrb[12].mxu0 }
 0x106   : > { %v468_v13 = vadd.f32 %v2349_v12, %v2951_v33  ;;  %v459_v14 = vpop.f32.mrb[13].mxu0 }
 0x107   : > { %v460_v15 = vadd.f32 %v2951_v33, %v459_v14  ;;  %v2350_v16 = vpop.f32.mrb[14].mxu0  ;;  %2391 = vmatprep.mubr.bf16.mxu1 %v574_v11 }
 0x108   : > { %v471_v17 = vadd.f32 %v2350_v16, %v2951_v33  ;;  %v462_v18 = vpop.f32.mrb[15].mxu0  ;;  %2392 = vmatmul.mubr.bf16.gmra.mrb[8].mxu1 %v575_v10  ;;  %v552_v20 = vmax.f32 %v468_v13, 0.0 }
 0x109   : > { %v463_v19 = vadd.f32 %v2951_v33, %v462_v18  ;;  %v550_v22 = vmax.f32 %v460_v15, 0.0 }
 0x10a   : > { %v553_v21 = vmax.f32 %v471_v17, 0.0 }
 0x10b   : > { %v551_v23 = vmax.f32 %v463_v19, 0.0  ;;  %v2697_v19 = vld [vmem:[%s3354_s2 + $0x78] sm:$0xff]  }
 0x10c   : > { %v577_v24 = vpack.c.bf16 %v553_v21, %v552_v20  ;;  %2429 = vmatprep.subr.bf16.mxu0 %v2697_v19  ;;  %v2698_v20 = vld [vmem:[%s3354_s2 + $0x80] sm:$0xff]   ;;  %v2700_v21 = vld [vmem:[%s3354_s2 + $0x90] sm:$0xff]  }
 0x10d   : > { %v576_v25 = vpack.c.bf16 %v551_v23, %v550_v22  ;;  %v2353_v26 = vpop.f32.mrb[16].mxu0  ;;  %2430 = vmatpush3.bf16.msra.mxu0 %v2697_v19  ;;  %2463 = vmatprep.subr.bf16.mxu1 %v2698_v20  ;;  %v2701_v22 = vld [vmem:[%s3354_s2 + $0x98] sm:$0xff]   ;;  %v2702_v23 = vld [vmem:[%s3354_s2 + $0xa0] sm:$0xff]  }
 0x10e   : > { %v484_v27 = vadd.f32 %v2353_v26, %v2951_v33  ;;  %v475_v28 = vpop.f32.mrb[17].mxu0  ;;  %2464 = vmatpush3.bf16.msra.mxu1 %v2698_v20  ;;  %v3012_v26 = vld [vmem:[%s3355_s3 + $0x1] ss:$0 sm:$0xff] }
 0x10f   : > { %v476_v29 = vadd.f32 %v2951_v33, %v475_v28  ;;  %v2354_v30 = vpop.f32.mrb[18].mxu0  ;;  %2395 = vmatprep.mubr.bf16.mxu1 %v576_v25  ;;  %v2704_v25 = vld [vmem:[%s3354_s2 + $0xb0] sm:$0xff]  }
 0x110   : > { %v487_v31 = vadd.f32 %v2354_v30, %v2951_v33  ;;  %v478_v32 = vpop.f32.mrb[19].mxu0  ;;  %2396 = vmatmul.mubr.bf16.gmra.mrb[12].mxu1 %v577_v24  ;;  %v556_v35 = vmax.f32 %v484_v27, 0.0  ;;  %v2703_v24 = vld [vmem:[%s3354_s2 + $0xa8] sm:$0xff]  }
 0x111   : > { %v479_v34 = vadd.f32 %v2951_v33, %v478_v32  ;;  %v554_v37 = vmax.f32 %v476_v29, 0.0 }
 0x112   : > { %v557_v36 = vmax.f32 %v487_v31, 0.0 }
 0x113   : > { %v555_v38 = vmax.f32 %v479_v34, 0.0 }
 0x114   : > { %v579_v39 = vpack.c.bf16 %v557_v36, %v556_v35 }
 0x115   : > { %v578_v40 = vpack.c.bf16 %v555_v38, %v554_v37  ;;  %v2357_v41 = vpop.f32.mrb[20].mxu0 }
 0x116   : > { %v500_v42 = vadd.f32 %v2357_v41, %v2951_v33  ;;  %v491_v43 = vpop.f32.mrb[21].mxu0 }
 0x117   : > { %v492_v44 = vadd.f32 %v2951_v33, %v491_v43  ;;  %v2358_v45 = vpop.f32.mrb[22].mxu0  ;;  %2399 = vmatprep.mubr.bf16.mxu1 %v578_v40 }
 0x118   : > { %v503_v46 = vadd.f32 %v2358_v45, %v2951_v33  ;;  %v494_v47 = vpop.f32.mrb[23].mxu0  ;;  %2400 = vmatmul.mubr.bf16.gmra.mrb[16].mxu1 %v579_v39  ;;  %v560_v49 = vmax.f32 %v500_v42, 0.0 }
 0x119   : > { %v495_v48 = vadd.f32 %v2951_v33, %v494_v47  ;;  %v558_v51 = vmax.f32 %v492_v44, 0.0 }
 0x11a   : > { %v561_v50 = vmax.f32 %v503_v46, 0.0 }
 0x11b   : > { %v559_v52 = vmax.f32 %v495_v48, 0.0 }
 0x11c   : > { %v581_v53 = vpack.c.bf16 %v561_v50, %v560_v49 }
 0x11d   : > { %v580_v54 = vpack.c.bf16 %v559_v52, %v558_v51  ;;  %v2361_v55 = vpop.f32.mrb[24].mxu0 }
 0x11e   : > { %v516_v56 = vadd.f32 %v2361_v55, %v2951_v33  ;;  %v507_v57 = vpop.f32.mrb[25].mxu0 }
 0x11f   : > { %v508_v58 = vadd.f32 %v2951_v33, %v507_v57  ;;  %v2362_v59 = vpop.f32.mrb[26].mxu0  ;;  %2403 = vmatprep.mubr.bf16.mxu1 %v580_v54 }
 0x120   : > { %v519_v60 = vadd.f32 %v2362_v59, %v2951_v33  ;;  %v510_v61 = vpop.f32.mrb[27].mxu0  ;;  %2404 = vmatmul.mubr.bf16.gmra.mrb[20].mxu1 %v581_v53  ;;  %v564_v63 = vmax.f32 %v516_v56, 0.0 }
 0x121   : > { %v511_v62 = vadd.f32 %v2951_v33, %v510_v61  ;;  %v562_v1 = vmax.f32 %v508_v58, 0.0 }
 0x122   : > { %v565_v0 = vmax.f32 %v519_v60, 0.0 }
 0x123   : > { %v563_v2 = vmax.f32 %v511_v62, 0.0 }
 0x124   : > { %v583_v3 = vpack.c.bf16 %v565_v0, %v564_v63 }
 0x125   : > { %v582_v4 = vpack.c.bf16 %v563_v2, %v562_v1  ;;  %v2365_v5 = vpop.f32.mrb[28].mxu0 }
 0x126   : > { %v532_v6 = vadd.f32 %v2365_v5, %v2951_v33  ;;  %v523_v7 = vpop.f32.mrb[29].mxu0 }
 0x127   : > { %v524_v8 = vadd.f32 %v2951_v33, %v523_v7  ;;  %v2366_v9 = vpop.f32.mrb[30].mxu0  ;;  %2407 = vmatprep.mubr.bf16.mxu1 %v582_v4 }
 0x128   : > { %v535_v10 = vadd.f32 %v2366_v9, %v2951_v33  ;;  %v526_v11 = vpop.f32.mrb[31].mxu0  ;;  %2408 = vmatmul.mubr.bf16.gmra.mrb[24].mxu1 %v583_v3  ;;  %v568_v13 = vmax.f32 %v532_v6, 0.0 }
 0x129   : > { %v527_v12 = vadd.f32 %v2951_v33, %v526_v11  ;;  %v566_v15 = vmax.f32 %v524_v8, 0.0  ;;  %v2699_v33 = vld [vmem:[%s3354_s2 + $0x88] sm:$0xff]  }
 0x12a   : > { %v569_v14 = vmax.f32 %v535_v10, 0.0  ;;  %2465 = vmatprep.subr.bf16.mxu1 %v2699_v33 }
 0x12b   : > { %v567_v16 = vmax.f32 %v527_v12, 0.0  ;;  %2466 = vmatpush3.bf16.msra.mxu1 %v2699_v33 }
 0x12c   : > { %v585_v17 = vpack.c.bf16 %v569_v14, %v568_v13  ;;  %2467 = vmatprep.subr.bf16.mxu1 %v2700_v21 }
 0x12d   : > { %v584_v18 = vpack.c.bf16 %v567_v16, %v566_v15 }
 0x12f   : > { %2411 = vmatprep.mubr.bf16.mxu1 %v584_v18  ;;  %2468 = vmatpush3.bf16.msra.mxu1 %v2700_v21 }
 0x130   : > { %2412 = vmatmul.mubr.bf16.gmra.mrb[28].mxu1 %v585_v17  ;;  %2469 = vmatprep.subr.bf16.mxu1 %v2701_v22 }
 0x133   : > { %2470 = vmatpush3.bf16.msra.mxu1 %v2701_v22 }
 0x134   : > { %2471 = vmatprep.subr.bf16.mxu1 %v2702_v23 }
 0x137   : > { %2472 = vmatpush3.bf16.msra.mxu1 %v2702_v23 }
 0x138   : > { %2473 = vmatprep.subr.bf16.mxu1 %v2703_v24 }
 0x13b   : > { %2474 = vmatpush3.bf16.msra.mxu1 %v2703_v24 }
 0x13c   : > { %2475 = vmatprep.subr.bf16.mxu1 %v2704_v25 }
 0x13f   : > { %2476 = vmatpush3.bf16.msra.mxu1 %v2704_v25 }
 0x1cb   : > { %v2385_v27 = vpop.f32.mrb[0].mxu1 }
 0x1cc   : > { %v698_v28 = vadd.f32 %v2385_v27, %v3012_v26  ;;  %v689_v29 = vpop.f32.mrb[1].mxu1 }
 0x1cd   : > { %v690_v30 = vadd.f32 %v3012_v26, %v689_v29  ;;  %v2386_v31 = vpop.f32.mrb[2].mxu1 }
 0x1ce   : > { %v701_v32 = vadd.f32 %v2386_v31, %v3012_v26  ;;  %v692_v34 = vpop.f32.mrb[3].mxu1  ;;  %v818_v36 = vmax.f32 %v698_v28, 0.0 }
 0x1cf   : > { %v693_v35 = vadd.f32 %v3012_v26, %v692_v34  ;;  %v816_v38 = vmax.f32 %v690_v30, 0.0 }
 0x1d0   : > { %v819_v37 = vmax.f32 %v701_v32, 0.0 }
 0x1d1   : > { %v817_v39 = vmax.f32 %v693_v35, 0.0 }
 0x1d2   : > { %v849_v40 = vpack.c.bf16 %v819_v37, %v818_v36 }
 0x1d3   : > { %v848_v41 = vpack.c.bf16 %v817_v39, %v816_v38  ;;  %v2389_v42 = vpop.f32.mrb[4].mxu1 }
 0x1d4   : > { %v714_v43 = vadd.f32 %v2389_v42, %v3012_v26  ;;  %v705_v44 = vpop.f32.mrb[5].mxu1 }
 0x1d5   : > { %v706_v45 = vadd.f32 %v3012_v26, %v705_v44  ;;  %v2390_v46 = vpop.f32.mrb[6].mxu1  ;;  %2431 = vmatprep.mubr.bf16.mxu0 %v848_v41 }
 0x1d6   : > { %v717_v47 = vadd.f32 %v2390_v46, %v3012_v26  ;;  %v708_v48 = vpop.f32.mrb[7].mxu1  ;;  %2432 = vmatmul.mubr.bf16.vlgmr.msra.gmra.mrb[32].mxu0 %v849_v40  ;;  %v822_v50 = vmax.f32 %v714_v43, 0.0 }
 0x1d7   : > { %v709_v49 = vadd.f32 %v3012_v26, %v708_v48  ;;  %v820_v52 = vmax.f32 %v706_v45, 0.0 }
 0x1d8   : > { %v823_v51 = vmax.f32 %v717_v47, 0.0 }
 0x1d9   : > { %v821_v53 = vmax.f32 %v709_v49, 0.0 }
 0x1da   : > { %v851_v54 = vpack.c.bf16 %v823_v51, %v822_v50 }
 0x1db   : > { %v850_v55 = vpack.c.bf16 %v821_v53, %v820_v52  ;;  %v2393_v56 = vpop.f32.mrb[8].mxu1 }
 0x1dc   : > { %v730_v57 = vadd.f32 %v2393_v56, %v3012_v26  ;;  %v721_v58 = vpop.f32.mrb[9].mxu1 }
 0x1dd   : > { %v722_v59 = vadd.f32 %v3012_v26, %v721_v58  ;;  %v2394_v60 = vpop.f32.mrb[10].mxu1  ;;  %2435 = vmatprep.mubr.bf16.mxu0 %v850_v55 }
 0x1de   : > { %v733_v61 = vadd.f32 %v2394_v60, %v3012_v26  ;;  %v724_v62 = vpop.f32.mrb[11].mxu1  ;;  %2436 = vmatmul.mubr.bf16.gmra.mrb[36].mxu0 %v851_v54  ;;  %v826_v0 = vmax.f32 %v730_v57, 0.0 }
 0x1df   : > { %v725_v63 = vadd.f32 %v3012_v26, %v724_v62  ;;  %v824_v2 = vmax.f32 %v722_v59, 0.0 }
 0x1e0   : > { %v827_v1 = vmax.f32 %v733_v61, 0.0 }
 0x1e1   : > { %v825_v3 = vmax.f32 %v725_v63, 0.0 }
 0x1e2   : > { %v853_v4 = vpack.c.bf16 %v827_v1, %v826_v0 }
 0x1e3   : > { %v852_v5 = vpack.c.bf16 %v825_v3, %v824_v2  ;;  %v2397_v6 = vpop.f32.mrb[12].mxu1 }
 0x1e4   : > { %v746_v7 = vadd.f32 %v2397_v6, %v3012_v26  ;;  %v737_v8 = vpop.f32.mrb[13].mxu1 }
 0x1e5   : > { %v738_v9 = vadd.f32 %v3012_v26, %v737_v8  ;;  %v2398_v10 = vpop.f32.mrb[14].mxu1  ;;  %2439 = vmatprep.mubr.bf16.mxu0 %v852_v5 }
 0x1e6   : > { %v749_v11 = vadd.f32 %v2398_v10, %v3012_v26  ;;  %v740_v12 = vpop.f32.mrb[15].mxu1  ;;  %2440 = vmatmul.mubr.bf16.gmra.mrb[40].mxu0 %v853_v4  ;;  %v830_v14 = vmax.f32 %v746_v7, 0.0 }
 0x1e7   : > { %v741_v13 = vadd.f32 %v3012_v26, %v740_v12  ;;  %v828_v16 = vmax.f32 %v738_v9, 0.0 }
 0x1e8   : > { %v831_v15 = vmax.f32 %v749_v11, 0.0 }
 0x1e9   : > { %v829_v17 = vmax.f32 %v741_v13, 0.0  ;;  %v2705_v13 = vld [vmem:[%s3354_s2 + $0xb8] sm:$0xff]  }
 0x1ea   : > { %v855_v18 = vpack.c.bf16 %v831_v15, %v830_v14  ;;  %2477 = vmatprep.subr.bf16.mxu1 %v2705_v13  ;;  %v2706_v14 = vld [vmem:[%s3354_s2 + $0xc0] sm:$0xff]   ;;  %v2708_v15 = vld [vmem:[%s3354_s2 + $0xd0] sm:$0xff]  }
 0x1eb   : > { %v854_v19 = vpack.c.bf16 %v829_v17, %v828_v16  ;;  %v2401_v20 = vpop.f32.mrb[16].mxu1  ;;  %2478 = vmatpush3.bf16.msra.mxu1 %v2705_v13  ;;  %2511 = vmatprep.subr.bf16.mxu0 %v2706_v14  ;;  %v2709_v16 = vld [vmem:[%s3354_s2 + $0xd8] sm:$0xff]   ;;  %v2710_v17 = vld [vmem:[%s3354_s2 + $0xe0] sm:$0xff]  }
 0x1ec   : > { %v762_v33 = vadd.f32 %v2401_v20, %v3012_v26  ;;  %v753_v21 = vpop.f32.mrb[17].mxu1  ;;  %2512 = vmatpush3.bf16.msra.mxu0 %v2706_v14  ;;  %v3073_v20 = vld [vmem:[%s3355_s3 + $0x2] ss:$0 sm:$0xff] }
 0x1ed   : > { %v754_v22 = vadd.f32 %v3012_v26, %v753_v21  ;;  %v2402_v23 = vpop.f32.mrb[18].mxu1  ;;  %2443 = vmatprep.mubr.bf16.mxu0 %v854_v19  ;;  %v2712_v19 = vld [vmem:[%s3354_s2 + $0xf0] sm:$0xff]  }
 0x1ee   : > { %v765_v24 = vadd.f32 %v2402_v23, %v3012_v26  ;;  %v756_v25 = vpop.f32.mrb[19].mxu1  ;;  %2444 = vmatmul.mubr.bf16.gmra.mrb[44].mxu0 %v855_v18  ;;  %v834_v28 = vmax.f32 %v762_v33, 0.0  ;;  %v2711_v18 = vld [vmem:[%s3354_s2 + $0xe8] sm:$0xff]  }
 0x1ef   : > { %v757_v27 = vadd.f32 %v3012_v26, %v756_v25  ;;  %v832_v30 = vmax.f32 %v754_v22, 0.0 }
 0x1f0   : > { %v835_v29 = vmax.f32 %v765_v24, 0.0 }
 0x1f1   : > { %v833_v31 = vmax.f32 %v757_v27, 0.0 }
 0x1f2   : > { %v857_v32 = vpack.c.bf16 %v835_v29, %v834_v28 }
 0x1f3   : > { %v856_v34 = vpack.c.bf16 %v833_v31, %v832_v30  ;;  %v2405_v35 = vpop.f32.mrb[20].mxu1 }
 0x1f4   : > { %v778_v36 = vadd.f32 %v2405_v35, %v3012_v26  ;;  %v769_v37 = vpop.f32.mrb[21].mxu1 }
 0x1f5   : > { %v770_v38 = vadd.f32 %v3012_v26, %v769_v37  ;;  %v2406_v39 = vpop.f32.mrb[22].mxu1  ;;  %2447 = vmatprep.mubr.bf16.mxu0 %v856_v34 }
 0x1f6   : > { %v781_v40 = vadd.f32 %v2406_v39, %v3012_v26  ;;  %v772_v41 = vpop.f32.mrb[23].mxu1  ;;  %2448 = vmatmul.mubr.bf16.gmra.mrb[48].mxu0 %v857_v32  ;;  %v838_v43 = vmax.f32 %v778_v36, 0.0 }
 0x1f7   : > { %v773_v42 = vadd.f32 %v3012_v26, %v772_v41  ;;  %v836_v45 = vmax.f32 %v770_v38, 0.0 }
 0x1f8   : > { %v839_v44 = vmax.f32 %v781_v40, 0.0 }
 0x1f9   : > { %v837_v46 = vmax.f32 %v773_v42, 0.0 }
 0x1fa   : > { %v859_v47 = vpack.c.bf16 %v839_v44, %v838_v43 }
 0x1fb   : > { %v858_v48 = vpack.c.bf16 %v837_v46, %v836_v45  ;;  %v2409_v49 = vpop.f32.mrb[24].mxu1 }
 0x1fc   : > { %v794_v50 = vadd.f32 %v2409_v49, %v3012_v26  ;;  %v785_v51 = vpop.f32.mrb[25].mxu1 }
 0x1fd   : > { %v786_v52 = vadd.f32 %v3012_v26, %v785_v51  ;;  %v2410_v53 = vpop.f32.mrb[26].mxu1  ;;  %2451 = vmatprep.mubr.bf16.mxu0 %v858_v48 }
 0x1fe   : > { %v797_v54 = vadd.f32 %v2410_v53, %v3012_v26  ;;  %v788_v55 = vpop.f32.mrb[27].mxu1  ;;  %2452 = vmatmul.mubr.bf16.gmra.mrb[52].mxu0 %v859_v47  ;;  %v842_v57 = vmax.f32 %v794_v50, 0.0 }
 0x1ff   : > { %v789_v56 = vadd.f32 %v3012_v26, %v788_v55  ;;  %v840_v59 = vmax.f32 %v786_v52, 0.0 }
 0x200   : > { %v843_v58 = vmax.f32 %v797_v54, 0.0 }
 0x201   : > { %v841_v60 = vmax.f32 %v789_v56, 0.0 }
 0x202   : > { %v861_v61 = vpack.c.bf16 %v843_v58, %v842_v57 }
 0x203   : > { %v860_v62 = vpack.c.bf16 %v841_v60, %v840_v59  ;;  %v2413_v63 = vpop.f32.mrb[28].mxu1 }
 0x204   : > { %v810_v0 = vadd.f32 %v2413_v63, %v3012_v26  ;;  %v801_v1 = vpop.f32.mrb[29].mxu1 }
 0x205   : > { %v802_v2 = vadd.f32 %v3012_v26, %v801_v1  ;;  %v2414_v3 = vpop.f32.mrb[30].mxu1  ;;  %2455 = vmatprep.mubr.bf16.mxu0 %v860_v62 }
 0x206   : > { %v813_v4 = vadd.f32 %v2414_v3, %v3012_v26  ;;  %v804_v5 = vpop.f32.mrb[31].mxu1  ;;  %2456 = vmatmul.mubr.bf16.gmra.mrb[56].mxu0 %v861_v61  ;;  %v846_v7 = vmax.f32 %v810_v0, 0.0 }
 0x207   : > { %v805_v6 = vadd.f32 %v3012_v26, %v804_v5  ;;  %v844_v9 = vmax.f32 %v802_v2, 0.0  ;;  %v2707_v26 = vld [vmem:[%s3354_s2 + $0xc8] sm:$0xff]  }
 0x208   : > { %v847_v8 = vmax.f32 %v813_v4, 0.0  ;;  %2513 = vmatprep.subr.bf16.mxu0 %v2707_v26 }
 0x209   : > { %v845_v10 = vmax.f32 %v805_v6, 0.0  ;;  %2514 = vmatpush3.bf16.msra.mxu0 %v2707_v26 }
 0x20a   : > { %v863_v11 = vpack.c.bf16 %v847_v8, %v846_v7  ;;  %2515 = vmatprep.subr.bf16.mxu0 %v2708_v15 }
 0x20b   : > { %v862_v12 = vpack.c.bf16 %v845_v10, %v844_v9 }
 0x20d   : > { %2459 = vmatprep.mubr.bf16.mxu0 %v862_v12  ;;  %2516 = vmatpush3.bf16.msra.mxu0 %v2708_v15 }
 0x20e   : > { %2460 = vmatmul.mubr.bf16.gmra.mrb[60].mxu0 %v863_v11  ;;  %2517 = vmatprep.subr.bf16.mxu0 %v2709_v16 }
 0x211   : > { %2518 = vmatpush3.bf16.msra.mxu0 %v2709_v16 }
 0x212   : > { %2519 = vmatprep.subr.bf16.mxu0 %v2710_v17 }
 0x215   : > { %2520 = vmatpush3.bf16.msra.mxu0 %v2710_v17 }
 0x216   : > { %2521 = vmatprep.subr.bf16.mxu0 %v2711_v18 }
 0x219   : > { %2522 = vmatpush3.bf16.msra.mxu0 %v2711_v18 }
 0x21a   : > { %2523 = vmatprep.subr.bf16.mxu0 %v2712_v19 }
 0x21d   : > { %2524 = vmatpush3.bf16.msra.mxu0 %v2712_v19 }
 0x2a9   : > { %v2433_v33 = vpop.f32.mrb[32].mxu0 }
 0x2aa   : > { %v977_v21 = vadd.f32 %v2433_v33, %v3073_v20  ;;  %v968_v22 = vpop.f32.mrb[33].mxu0 }
 0x2ab   : > { %v969_v23 = vadd.f32 %v3073_v20, %v968_v22  ;;  %v2434_v24 = vpop.f32.mrb[34].mxu0 }
 0x2ac   : > { %v980_v25 = vadd.f32 %v2434_v24, %v3073_v20  ;;  %v971_v27 = vpop.f32.mrb[35].mxu0  ;;  %v1097_v29 = vmax.f32 %v977_v21, 0.0 }
 0x2ad   : > { %v972_v28 = vadd.f32 %v3073_v20, %v971_v27  ;;  %v1095_v31 = vmax.f32 %v969_v23, 0.0 }
 0x2ae   : > { %v1098_v30 = vmax.f32 %v980_v25, 0.0 }
 0x2af   : > { %v1096_v32 = vmax.f32 %v972_v28, 0.0 }
 0x2b0   : > { %v1128_v34 = vpack.c.bf16 %v1098_v30, %v1097_v29 }
 0x2b1   : > { %v1127_v35 = vpack.c.bf16 %v1096_v32, %v1095_v31  ;;  %v2437_v36 = vpop.f32.mrb[36].mxu0 }
 0x2b2   : > { %v993_v37 = vadd.f32 %v2437_v36, %v3073_v20  ;;  %v984_v38 = vpop.f32.mrb[37].mxu0 }
 0x2b3   : > { %v985_v39 = vadd.f32 %v3073_v20, %v984_v38  ;;  %v2438_v40 = vpop.f32.mrb[38].mxu0  ;;  %2479 = vmatprep.mubr.bf16.mxu1 %v1127_v35 }
 0x2b4   : > { %v996_v41 = vadd.f32 %v2438_v40, %v3073_v20  ;;  %v987_v42 = vpop.f32.mrb[39].mxu0  ;;  %2480 = vmatmul.mubr.bf16.vlgmr.msra.gmra.mrb[32].mxu1 %v1128_v34  ;;  %v1101_v44 = vmax.f32 %v993_v37, 0.0 }
 0x2b5   : > { %v988_v43 = vadd.f32 %v3073_v20, %v987_v42  ;;  %v1099_v46 = vmax.f32 %v985_v39, 0.0 }
 0x2b6   : > { %v1102_v45 = vmax.f32 %v996_v41, 0.0 }
 0x2b7   : > { %v1100_v47 = vmax.f32 %v988_v43, 0.0 }
 0x2b8   : > { %v1130_v48 = vpack.c.bf16 %v1102_v45, %v1101_v44 }
 0x2b9   : > { %v1129_v49 = vpack.c.bf16 %v1100_v47, %v1099_v46  ;;  %v2441_v50 = vpop.f32.mrb[40].mxu0 }
 0x2ba   : > { %v1009_v51 = vadd.f32 %v2441_v50, %v3073_v20  ;;  %v1000_v52 = vpop.f32.mrb[41].mxu0 }
 0x2bb   : > { %v1001_v53 = vadd.f32 %v3073_v20, %v1000_v52  ;;  %v2442_v54 = vpop.f32.mrb[42].mxu0  ;;  %2483 = vmatprep.mubr.bf16.mxu1 %v1129_v49 }
 0x2bc   : > { %v1012_v55 = vadd.f32 %v2442_v54, %v3073_v20  ;;  %v1003_v56 = vpop.f32.mrb[43].mxu0  ;;  %2484 = vmatmul.mubr.bf16.gmra.mrb[36].mxu1 %v1130_v48  ;;  %v1105_v58 = vmax.f32 %v1009_v51, 0.0 }
 0x2bd   : > { %v1004_v57 = vadd.f32 %v3073_v20, %v1003_v56  ;;  %v1103_v60 = vmax.f32 %v1001_v53, 0.0 }
 0x2be   : > { %v1106_v59 = vmax.f32 %v1012_v55, 0.0 }
 0x2bf   : > { %v1104_v61 = vmax.f32 %v1004_v57, 0.0 }
 0x2c0   : > { %v1132_v62 = vpack.c.bf16 %v1106_v59, %v1105_v58 }
 0x2c1   : > { %v1131_v63 = vpack.c.bf16 %v1104_v61, %v1103_v60  ;;  %v2445_v0 = vpop.f32.mrb[44].mxu0 }
 0x2c2   : > { %v1025_v1 = vadd.f32 %v2445_v0, %v3073_v20  ;;  %v1016_v2 = vpop.f32.mrb[45].mxu0 }
 0x2c3   : > { %v1017_v3 = vadd.f32 %v3073_v20, %v1016_v2  ;;  %v2446_v4 = vpop.f32.mrb[46].mxu0  ;;  %2487 = vmatprep.mubr.bf16.mxu1 %v1131_v63 }
 0x2c4   : > { %v1028_v5 = vadd.f32 %v2446_v4, %v3073_v20  ;;  %v1019_v6 = vpop.f32.mrb[47].mxu0  ;;  %2488 = vmatmul.mubr.bf16.gmra.mrb[40].mxu1 %v1132_v62  ;;  %v1109_v8 = vmax.f32 %v1025_v1, 0.0 }
 0x2c5   : > { %v1020_v7 = vadd.f32 %v3073_v20, %v1019_v6  ;;  %v1107_v10 = vmax.f32 %v1017_v3, 0.0 }
 0x2c6   : > { %v1110_v9 = vmax.f32 %v1028_v5, 0.0 }
 0x2c7   : > { %v1108_v11 = vmax.f32 %v1020_v7, 0.0  ;;  %v2713_v7 = vld [vmem:[%s3354_s2 + $0xf8] sm:$0xff]  }
 0x2c8   : > { %v1134_v12 = vpack.c.bf16 %v1110_v9, %v1109_v8  ;;  %2525 = vmatprep.subr.bf16.mxu0 %v2713_v7  ;;  %v2714_v8 = vld [vmem:[%s3354_s2 + $0x100] sm:$0xff]   ;;  %v2716_v9 = vld [vmem:[%s3354_s2 + $0x110] sm:$0xff]  }
 0x2c9   : > { %v1133_v13 = vpack.c.bf16 %v1108_v11, %v1107_v10  ;;  %v2449_v14 = vpop.f32.mrb[48].mxu0  ;;  %2526 = vmatpush3.bf16.msra.mxu0 %v2713_v7  ;;  %2607 = vmatprep.subr.bf16.mxu1 %v2714_v8  ;;  %v3122_v10 = vld [vmem:[%s3354_s2 + $0x118] sm:$0xff]   ;;  %v3128_v11 = vld [vmem:[%s3354_s2 + $0x120] sm:$0xff]  }
 0x2ca   : > { %v1041_v26 = vadd.f32 %v2449_v14, %v3073_v20  ;;  %v1032_v15 = vpop.f32.mrb[49].mxu0  ;;  %2559 = vmatprep.subr.bf16.mxu0 %v2714_v8  ;;  %2615 = vmatpush3.bf16.msra.mxu1 %v2714_v8 }
 0x2cb   : > { %v1033_v16 = vadd.f32 %v3073_v20, %v1032_v15  ;;  %v2450_v17 = vpop.f32.mrb[50].mxu0  ;;  %2491 = vmatprep.mubr.bf16.mxu1 %v1133_v13  ;;  %v3143_v13 = vld [vmem:[%s3355_s3 + $0x3] ss:$0 sm:$0xff] }
 0x2cc   : > { %v1044_v18 = vadd.f32 %v2450_v17, %v3073_v20  ;;  %v1035_v19 = vpop.f32.mrb[51].mxu0  ;;  %2492 = vmatmul.mubr.bf16.gmra.mrb[44].mxu1 %v1134_v12  ;;  %v1113_v21 = vmax.f32 %v1041_v26, 0.0  ;;  %v3135_v12 = vld [vmem:[%s3354_s2 + $0x128] sm:$0xff]  }
 0x2cd   : > { %v1036_v33 = vadd.f32 %v3073_v20, %v1035_v19  ;;  %v1111_v23 = vmax.f32 %v1033_v16, 0.0 }
 0x2ce   : > { %v1114_v22 = vmax.f32 %v1044_v18, 0.0 }
 0x2cf   : > { %v1112_v24 = vmax.f32 %v1036_v33, 0.0 }
 0x2d0   : > { %v1136_v25 = vpack.c.bf16 %v1114_v22, %v1113_v21 }
 0x2d1   : > { %v1135_v27 = vpack.c.bf16 %v1112_v24, %v1111_v23  ;;  %v2453_v28 = vpop.f32.mrb[52].mxu0 }
 0x2d2   : > { %v1057_v29 = vadd.f32 %v2453_v28, %v3073_v20  ;;  %v1048_v30 = vpop.f32.mrb[53].mxu0 }
 0x2d3   : > { %v1049_v31 = vadd.f32 %v3073_v20, %v1048_v30  ;;  %v2454_v32 = vpop.f32.mrb[54].mxu0  ;;  %2495 = vmatprep.mubr.bf16.mxu1 %v1135_v27 }
 0x2d4   : > { %v1060_v34 = vadd.f32 %v2454_v32, %v3073_v20  ;;  %v1051_v35 = vpop.f32.mrb[55].mxu0  ;;  %2496 = vmatmul.mubr.bf16.gmra.mrb[48].mxu1 %v1136_v25  ;;  %v1117_v37 = vmax.f32 %v1057_v29, 0.0 }
 0x2d5   : > { %v1052_v36 = vadd.f32 %v3073_v20, %v1051_v35  ;;  %v1115_v39 = vmax.f32 %v1049_v31, 0.0 }
 0x2d6   : > { %v1118_v38 = vmax.f32 %v1060_v34, 0.0 }
 0x2d7   : > { %v1116_v40 = vmax.f32 %v1052_v36, 0.0 }
 0x2d8   : > { %v1138_v41 = vpack.c.bf16 %v1118_v38, %v1117_v37 }
 0x2d9   : > { %v1137_v42 = vpack.c.bf16 %v1116_v40, %v1115_v39  ;;  %v2457_v43 = vpop.f32.mrb[56].mxu0 }
 0x2da   : > { %v1073_v44 = vadd.f32 %v2457_v43, %v3073_v20  ;;  %v1064_v45 = vpop.f32.mrb[57].mxu0 }
 0x2db   : > { %v1065_v46 = vadd.f32 %v3073_v20, %v1064_v45  ;;  %v2458_v47 = vpop.f32.mrb[58].mxu0  ;;  %2499 = vmatprep.mubr.bf16.mxu1 %v1137_v42 }
 0x2dc   : > { %v1076_v48 = vadd.f32 %v2458_v47, %v3073_v20  ;;  %v1067_v49 = vpop.f32.mrb[59].mxu0  ;;  %2500 = vmatmul.mubr.bf16.gmra.mrb[52].mxu1 %v1138_v41  ;;  %v1121_v51 = vmax.f32 %v1073_v44, 0.0 }
 0x2dd   : > { %v1068_v50 = vadd.f32 %v3073_v20, %v1067_v49  ;;  %v1119_v53 = vmax.f32 %v1065_v46, 0.0 }
 0x2de   : > { %v1122_v52 = vmax.f32 %v1076_v48, 0.0 }
 0x2df   : > { %v1120_v54 = vmax.f32 %v1068_v50, 0.0 }
 0x2e0   : > { %v1140_v55 = vpack.c.bf16 %v1122_v52, %v1121_v51 }
 0x2e1   : > { %v1139_v56 = vpack.c.bf16 %v1120_v54, %v1119_v53  ;;  %v2461_v57 = vpop.f32.mrb[60].mxu0 }
 0x2e2   : > { %v1089_v58 = vadd.f32 %v2461_v57, %v3073_v20  ;;  %v1080_v59 = vpop.f32.mrb[61].mxu0 }
 0x2e3   : > { %v1081_v60 = vadd.f32 %v3073_v20, %v1080_v59  ;;  %v2462_v61 = vpop.f32.mrb[62].mxu0  ;;  %2503 = vmatprep.mubr.bf16.mxu1 %v1139_v56 }
 0x2e4   : > { %v1092_v62 = vadd.f32 %v2462_v61, %v3073_v20  ;;  %v1083_v63 = vpop.f32.mrb[63].mxu0  ;;  %2504 = vmatmul.mubr.bf16.gmra.mrb[56].mxu1 %v1140_v55  ;;  %v1125_v1 = vmax.f32 %v1089_v58, 0.0 }
 0x2e5   : > { %v1084_v0 = vadd.f32 %v3073_v20, %v1083_v63  ;;  %v1123_v3 = vmax.f32 %v1081_v60, 0.0  ;;  %v2715_v20 = vld [vmem:[%s3354_s2 + $0x108] sm:$0xff]  }
 0x2e6   : > { %v1126_v2 = vmax.f32 %v1092_v62, 0.0  ;;  %2608 = vmatprep.subr.bf16.mxu1 %v2715_v20 }
 0x2e7   : > { %v1124_v4 = vmax.f32 %v1084_v0, 0.0  ;;  %2616 = vmatpush3.bf16.msra.mxu1 %v2715_v20 }
 0x2e8   : > { %v1142_v5 = vpack.c.bf16 %v1126_v2, %v1125_v1  ;;  %2609 = vmatprep.subr.bf16.mxu1 %v2716_v9 }
 0x2e9   : > { %v1141_v6 = vpack.c.bf16 %v1124_v4, %v1123_v3 }
 0x2eb   : > { %2507 = vmatprep.mubr.bf16.mxu1 %v1141_v6  ;;  %2617 = vmatpush3.bf16.msra.mxu1 %v2716_v9 }
 0x2ec   : > { %2508 = vmatmul.mubr.bf16.gmra.mrb[60].mxu1 %v1142_v5  ;;  %2610 = vmatprep.subr.bf16.mxu1 %v3122_v10 }
 0x2ef   : > { %2618 = vmatpush3.bf16.msra.mxu1 %v3122_v10 }
 0x2f0   : > { %2611 = vmatprep.subr.bf16.mxu1 %v3128_v11 }
 0x2f3   : > { %2619 = vmatpush3.bf16.msra.mxu1 %v3128_v11 }
 0x2f4   : > { %2612 = vmatprep.subr.bf16.mxu1 %v3135_v12 }
 0x2f7   : > { %2620 = vmatpush3.bf16.msra.mxu1 %v3135_v12 }
 0x387   : > { %v2481_v14 = vpop.f32.mrb[32].mxu1 }
 0x388   : > { %v1256_v26 = vadd.f32 %v2481_v14, %v3143_v13  ;;  %v1247_v15 = vpop.f32.mrb[33].mxu1 }
 0x389   : > { %v1248_v16 = vadd.f32 %v3143_v13, %v1247_v15  ;;  %v2482_v17 = vpop.f32.mrb[34].mxu1 }
 0x38a   : > { %v1259_v18 = vadd.f32 %v2482_v17, %v3143_v13  ;;  %v1250_v19 = vpop.f32.mrb[35].mxu1  ;;  %v1376_v21 = vmax.f32 %v1256_v26, 0.0 }
 0x38b   : > { %v1251_v33 = vadd.f32 %v3143_v13, %v1250_v19  ;;  %v1374_v23 = vmax.f32 %v1248_v16, 0.0 }
 0x38c   : > { %v1377_v22 = vmax.f32 %v1259_v18, 0.0 }
 0x38d   : > { %v1375_v24 = vmax.f32 %v1251_v33, 0.0 }
 0x38e   : > { %v1407_v25 = vpack.c.bf16 %v1377_v22, %v1376_v21 }
 0x38f   : > { %v1406_v27 = vpack.c.bf16 %v1375_v24, %v1374_v23  ;;  %v2485_v28 = vpop.f32.mrb[36].mxu1 }
 0x390   : > { %v1272_v29 = vadd.f32 %v2485_v28, %v3143_v13  ;;  %v1263_v30 = vpop.f32.mrb[37].mxu1 }
 0x391   : > { %v1264_v31 = vadd.f32 %v3143_v13, %v1263_v30  ;;  %v2486_v32 = vpop.f32.mrb[38].mxu1  ;;  %2527 = vmatprep.mubr.bf16.mxu0 %v1406_v27 }
 0x392   : > { %v1275_v34 = vadd.f32 %v2486_v32, %v3143_v13  ;;  %v1266_v35 = vpop.f32.mrb[39].mxu1  ;;  %2528 = vmatmul.mubr.bf16.vlgmr.msra.gmra.mrb[64].mxu0 %v1407_v25  ;;  %v1380_v37 = vmax.f32 %v1272_v29, 0.0 }
 0x393   : > { %v1267_v36 = vadd.f32 %v3143_v13, %v1266_v35  ;;  %2560 = vmatpush3.bf16.msra.mxu0 %v2714_v8  ;;  %v1378_v39 = vmax.f32 %v1264_v31, 0.0 }
 0x394   : > { %v1381_v38 = vmax.f32 %v1275_v34, 0.0  ;;  %2561 = vmatprep.subr.bf16.mxu0 %v2715_v20 }
 0x395   : > { %v1379_v40 = vmax.f32 %v1267_v36, 0.0 }
 0x396   : > { %v1409_v41 = vpack.c.bf16 %v1381_v38, %v1380_v37 }
 0x397   : > { %v1408_v42 = vpack.c.bf16 %v1379_v40, %v1378_v39  ;;  %v2489_v43 = vpop.f32.mrb[40].mxu1  ;;  %2562 = vmatpush3.bf16.msra.mxu0 %v2715_v20 }
 0x398   : > { %v1288_v44 = vadd.f32 %v2489_v43, %v3143_v13  ;;  %v1279_v45 = vpop.f32.mrb[41].mxu1  ;;  %2563 = vmatprep.subr.bf16.mxu0 %v2716_v9 }
 0x399   : > { %v1280_v46 = vadd.f32 %v3143_v13, %v1279_v45  ;;  %v2490_v47 = vpop.f32.mrb[42].mxu1  ;;  %2531 = vmatprep.mubr.bf16.mxu0 %v1408_v42 }
 0x39a   : > { %v1291_v48 = vadd.f32 %v2490_v47, %v3143_v13  ;;  %v1282_v49 = vpop.f32.mrb[43].mxu1  ;;  %2532 = vmatmul.mubr.bf16.gmra.mrb[68].mxu0 %v1409_v41  ;;  %v1384_v51 = vmax.f32 %v1288_v44, 0.0 }
 0x39b   : > { %v1283_v50 = vadd.f32 %v3143_v13, %v1282_v49  ;;  %2564 = vmatpush3.bf16.msra.mxu0 %v2716_v9  ;;  %v1382_v53 = vmax.f32 %v1280_v46, 0.0 }
 0x39c   : > { %v1385_v52 = vmax.f32 %v1291_v48, 0.0  ;;  %2565 = vmatprep.subr.bf16.mxu0 %v3122_v10 }
 0x39d   : > { %v1383_v54 = vmax.f32 %v1283_v50, 0.0 }
 0x39e   : > { %v1411_v55 = vpack.c.bf16 %v1385_v52, %v1384_v51 }
 0x39f   : > { %v1410_v56 = vpack.c.bf16 %v1383_v54, %v1382_v53  ;;  %v2493_v57 = vpop.f32.mrb[44].mxu1  ;;  %2566 = vmatpush3.bf16.msra.mxu0 %v3122_v10 }
 0x3a0   : > { %v1304_v58 = vadd.f32 %v2493_v57, %v3143_v13  ;;  %v1295_v59 = vpop.f32.mrb[45].mxu1  ;;  %2567 = vmatprep.subr.bf16.mxu0 %v3128_v11 }
 0x3a1   : > { %v1296_v60 = vadd.f32 %v3143_v13, %v1295_v59  ;;  %v2494_v61 = vpop.f32.mrb[46].mxu1  ;;  %2535 = vmatprep.mubr.bf16.mxu0 %v1410_v56 }
 0x3a2   : > { %v1307_v62 = vadd.f32 %v2494_v61, %v3143_v13  ;;  %v1298_v63 = vpop.f32.mrb[47].mxu1  ;;  %2536 = vmatmul.mubr.bf16.gmra.mrb[72].mxu0 %v1411_v55  ;;  %v1388_v1 = vmax.f32 %v1304_v58, 0.0 }
 0x3a3   : > { %v1299_v0 = vadd.f32 %v3143_v13, %v1298_v63  ;;  %2568 = vmatpush3.bf16.msra.mxu0 %v3128_v11  ;;  %v1386_v3 = vmax.f32 %v1296_v60, 0.0 }
 0x3a4   : > { %v1389_v2 = vmax.f32 %v1307_v62, 0.0  ;;  %2569 = vmatprep.subr.bf16.mxu0 %v3135_v12 }
 0x3a5   : > { %v1387_v4 = vmax.f32 %v1299_v0, 0.0  ;;  %v2720_v0 = vld [vmem:[%s3354_s2 + $0x130] sm:$0xff]  }
 0x3a6   : > { %v1413_v5 = vpack.c.bf16 %v1389_v2, %v1388_v1  ;;  %2613 = vmatprep.subr.bf16.mxu1 %v2720_v0  ;;  %v3192_v1 = vld [vmem:[%s3355_s3 + $0x4] ss:$0 sm:$0xff] }
 0x3a7   : > { %v1412_v6 = vpack.c.bf16 %v1387_v4, %v1386_v3  ;;  %v2497_v7 = vpop.f32.mrb[48].mxu1  ;;  %2570 = vmatpush3.bf16.msra.mxu0 %v3135_v12  ;;  %2621 = vmatpush3.bf16.msra.mxu1 %v2720_v0 }
 0x3a8   : > { %v1320_v8 = vadd.f32 %v2497_v7, %v3143_v13  ;;  %v1311_v20 = vpop.f32.mrb[49].mxu1  ;;  %2571 = vmatprep.subr.bf16.mxu0 %v2720_v0 }
 0x3a9   : > { %v1312_v9 = vadd.f32 %v3143_v13, %v1311_v20  ;;  %v2498_v10 = vpop.f32.mrb[50].mxu1  ;;  %2539 = vmatprep.mubr.bf16.mxu0 %v1412_v6 }
 0x3aa   : > { %v1323_v11 = vadd.f32 %v2498_v10, %v3143_v13  ;;  %v1314_v14 = vpop.f32.mrb[51].mxu1  ;;  %2540 = vmatmul.mubr.bf16.gmra.mrb[76].mxu0 %v1413_v5  ;;  %v1392_v15 = vmax.f32 %v1320_v8, 0.0 }
 0x3ab   : > { %v1315_v26 = vadd.f32 %v3143_v13, %v1314_v14  ;;  %v1390_v17 = vmax.f32 %v1312_v9, 0.0  ;;  %2572 = vmatpush3.bf16.msra.mxu0 %v2720_v0 }
 0x3ac   : > { %v1393_v16 = vmax.f32 %v1323_v11, 0.0 }
 0x3ad   : > { %v1391_v18 = vmax.f32 %v1315_v26, 0.0 }
 0x3ae   : > { %v1415_v19 = vpack.c.bf16 %v1393_v16, %v1392_v15 }
 0x3af   : > { %v1414_v33 = vpack.c.bf16 %v1391_v18, %v1390_v17  ;;  %v2501_v12 = vpop.f32.mrb[52].mxu1 }
 0x3b0   : > { %v1336_v21 = vadd.f32 %v2501_v12, %v3143_v13  ;;  %v1327_v22 = vpop.f32.mrb[53].mxu1 }
 0x3b1   : > { %v1328_v23 = vadd.f32 %v3143_v13, %v1327_v22  ;;  %v2502_v24 = vpop.f32.mrb[54].mxu1  ;;  %2543 = vmatprep.mubr.bf16.mxu0 %v1414_v33 }
 0x3b2   : > { %v1339_v25 = vadd.f32 %v2502_v24, %v3143_v13  ;;  %v1330_v27 = vpop.f32.mrb[55].mxu1  ;;  %2544 = vmatmul.mubr.bf16.gmra.mrb[80].mxu0 %v1415_v19  ;;  %v1396_v29 = vmax.f32 %v1336_v21, 0.0 }
 0x3b3   : > { %v1331_v28 = vadd.f32 %v3143_v13, %v1330_v27  ;;  %v1394_v31 = vmax.f32 %v1328_v23, 0.0 }
 0x3b4   : > { %v1397_v30 = vmax.f32 %v1339_v25, 0.0 }
 0x3b5   : > { %v1395_v32 = vmax.f32 %v1331_v28, 0.0 }
 0x3b6   : > { %v1417_v34 = vpack.c.bf16 %v1397_v30, %v1396_v29 }
 0x3b7   : > { %v1416_v35 = vpack.c.bf16 %v1395_v32, %v1394_v31  ;;  %v2505_v36 = vpop.f32.mrb[56].mxu1 }
 0x3b8   : > { %v1352_v37 = vadd.f32 %v2505_v36, %v3143_v13  ;;  %v1343_v38 = vpop.f32.mrb[57].mxu1 }
 0x3b9   : > { %v1344_v39 = vadd.f32 %v3143_v13, %v1343_v38  ;;  %v2506_v40 = vpop.f32.mrb[58].mxu1  ;;  %2547 = vmatprep.mubr.bf16.mxu0 %v1416_v35 }
 0x3ba   : > { %v1355_v41 = vadd.f32 %v2506_v40, %v3143_v13  ;;  %v1346_v42 = vpop.f32.mrb[59].mxu1  ;;  %2548 = vmatmul.mubr.bf16.gmra.mrb[84].mxu0 %v1417_v34  ;;  %v1400_v44 = vmax.f32 %v1352_v37, 0.0 }
 0x3bb   : > { %v1347_v43 = vadd.f32 %v3143_v13, %v1346_v42  ;;  %v1398_v46 = vmax.f32 %v1344_v39, 0.0 }
 0x3bc   : > { %v1401_v45 = vmax.f32 %v1355_v41, 0.0 }
 0x3bd   : > { %v1399_v47 = vmax.f32 %v1347_v43, 0.0 }
 0x3be   : > { %v1419_v48 = vpack.c.bf16 %v1401_v45, %v1400_v44 }
 0x3bf   : > { %v1418_v49 = vpack.c.bf16 %v1399_v47, %v1398_v46  ;;  %v2509_v50 = vpop.f32.mrb[60].mxu1 }
 0x3c0   : > { %v1368_v51 = vadd.f32 %v2509_v50, %v3143_v13  ;;  %v1359_v52 = vpop.f32.mrb[61].mxu1 }
 0x3c1   : > { %v1360_v53 = vadd.f32 %v3143_v13, %v1359_v52  ;;  %v2510_v54 = vpop.f32.mrb[62].mxu1  ;;  %2551 = vmatprep.mubr.bf16.mxu0 %v1418_v49 }
 0x3c2   : > { %v1371_v55 = vadd.f32 %v2510_v54, %v3143_v13  ;;  %v1362_v56 = vpop.f32.mrb[63].mxu1  ;;  %2552 = vmatmul.mubr.bf16.gmra.mrb[88].mxu0 %v1419_v48  ;;  %v1404_v58 = vmax.f32 %v1368_v51, 0.0 }
 0x3c3   : > { %v1363_v57 = vadd.f32 %v3143_v13, %v1362_v56  ;;  %v1402_v60 = vmax.f32 %v1360_v53, 0.0  ;;  %v2721_v13 = vld [vmem:[%s3354_s2 + $0x138] sm:$0xff]  }
 0x3c4   : > { %v1405_v59 = vmax.f32 %v1371_v55, 0.0  ;;  %2573 = vmatprep.subr.bf16.mxu0 %v2721_v13  ;;  %2614 = vmatprep.subr.bf16.mxu1 %v2721_v13 }
 0x3c5   : > { %v1403_v61 = vmax.f32 %v1363_v57, 0.0  ;;  %2574 = vmatpush3.bf16.msra.mxu0 %v2721_v13  ;;  %2622 = vmatpush3.bf16.msra.mxu1 %v2721_v13 }
 0x3c6   : > { %v1421_v62 = vpack.c.bf16 %v1405_v59, %v1404_v58 }
 0x3c7   : > { %v1420_v63 = vpack.c.bf16 %v1403_v61, %v1402_v60 }
 0x3c9   : > { %2555 = vmatprep.mubr.bf16.mxu0 %v1420_v63 }
 0x3ca   : > { %2556 = vmatmul.mubr.bf16.gmra.mrb[92].mxu0 %v1421_v62 }
 0x465   : > { %v2529_v2 = vpop.f32.mrb[64].mxu0 }
 0x466   : > { %v1535_v3 = vadd.f32 %v2529_v2, %v3192_v1  ;;  %v1526_v4 = vpop.f32.mrb[65].mxu0 }
 0x467   : > { %v1527_v5 = vadd.f32 %v3192_v1, %v1526_v4  ;;  %v2530_v6 = vpop.f32.mrb[66].mxu0 }
 0x468   : > { %v1538_v7 = vadd.f32 %v2530_v6, %v3192_v1  ;;  %v1529_v8 = vpop.f32.mrb[67].mxu0  ;;  %v1655_v9 = vmax.f32 %v1535_v3, 0.0 }
 0x469   : > { %v1530_v20 = vadd.f32 %v3192_v1, %v1529_v8  ;;  %v1653_v11 = vmax.f32 %v1527_v5, 0.0 }
 0x46a   : > { %v1656_v10 = vmax.f32 %v1538_v7, 0.0 }
 0x46b   : > { %v1654_v14 = vmax.f32 %v1530_v20, 0.0 }
 0x46c   : > { %v1686_v26 = vpack.c.bf16 %v1656_v10, %v1655_v9 }
 0x46d   : > { %v1685_v15 = vpack.c.bf16 %v1654_v14, %v1653_v11  ;;  %v2533_v16 = vpop.f32.mrb[68].mxu0 }
 0x46e   : > { %v1551_v17 = vadd.f32 %v2533_v16, %v3192_v1  ;;  %v1542_v18 = vpop.f32.mrb[69].mxu0 }
 0x46f   : > { %v1543_v19 = vadd.f32 %v3192_v1, %v1542_v18  ;;  %v2534_v33 = vpop.f32.mrb[70].mxu0  ;;  %2575 = vmatprep.mubr.bf16.mxu0 %v1685_v15 }
 0x470   : > { %v1554_v12 = vadd.f32 %v2534_v33, %v3192_v1  ;;  %v1545_v21 = vpop.f32.mrb[71].mxu0  ;;  %2576 = vmatmul.mubr.bf16.vlgmr.msra.gmra.mrb[96].mxu0 %v1686_v26  ;;  %v1659_v23 = vmax.f32 %v1551_v17, 0.0 }
 0x471   : > { %v1546_v22 = vadd.f32 %v3192_v1, %v1545_v21  ;;  %v1657_v25 = vmax.f32 %v1543_v19, 0.0 }
 0x472   : > { %v1660_v24 = vmax.f32 %v1554_v12, 0.0 }
 0x473   : > { %v1658_v27 = vmax.f32 %v1546_v22, 0.0 }
 0x474   : > { %v1688_v28 = vpack.c.bf16 %v1660_v24, %v1659_v23 }
 0x475   : > { %v1687_v29 = vpack.c.bf16 %v1658_v27, %v1657_v25  ;;  %v2537_v30 = vpop.f32.mrb[72].mxu0 }
 0x476   : > { %v1567_v31 = vadd.f32 %v2537_v30, %v3192_v1  ;;  %v1558_v32 = vpop.f32.mrb[73].mxu0 }
 0x477   : > { %v1559_v34 = vadd.f32 %v3192_v1, %v1558_v32  ;;  %v2538_v35 = vpop.f32.mrb[74].mxu0  ;;  %2579 = vmatprep.mubr.bf16.mxu1 %v1687_v29 }
 0x478   : > { %v1570_v36 = vadd.f32 %v2538_v35, %v3192_v1  ;;  %v1561_v37 = vpop.f32.mrb[75].mxu0  ;;  %2580 = vmatmul.mubr.bf16.vlgmr.msra.gmra.mrb[64].mxu1 %v1688_v28  ;;  %v1663_v39 = vmax.f32 %v1567_v31, 0.0 }
 0x479   : > { %v1562_v38 = vadd.f32 %v3192_v1, %v1561_v37  ;;  %v1661_v41 = vmax.f32 %v1559_v34, 0.0 }
 0x47a   : > { %v1664_v40 = vmax.f32 %v1570_v36, 0.0 }
 0x47b   : > { %v1662_v42 = vmax.f32 %v1562_v38, 0.0 }
 0x47c   : > { %v1690_v43 = vpack.c.bf16 %v1664_v40, %v1663_v39 }
 0x47d   : > { %v1689_v44 = vpack.c.bf16 %v1662_v42, %v1661_v41  ;;  %v2541_v45 = vpop.f32.mrb[76].mxu0 }
 0x47e   : > { %v1583_v46 = vadd.f32 %v2541_v45, %v3192_v1  ;;  %v1574_v47 = vpop.f32.mrb[77].mxu0 }
 0x47f   : > { %v1575_v48 = vadd.f32 %v3192_v1, %v1574_v47  ;;  %v2542_v49 = vpop.f32.mrb[78].mxu0  ;;  %2583 = vmatprep.mubr.bf16.mxu1 %v1689_v44 }
 0x480   : > { %v1586_v50 = vadd.f32 %v2542_v49, %v3192_v1  ;;  %v1577_v51 = vpop.f32.mrb[79].mxu0  ;;  %2584 = vmatmul.mubr.bf16.gmra.mrb[68].mxu1 %v1690_v43  ;;  %v1667_v53 = vmax.f32 %v1583_v46, 0.0 }
 0x481   : > { %v1578_v52 = vadd.f32 %v3192_v1, %v1577_v51  ;;  %v1665_v55 = vmax.f32 %v1575_v48, 0.0 }
 0x482   : > { %v1668_v54 = vmax.f32 %v1586_v50, 0.0 }
 0x483   : > { %v1666_v56 = vmax.f32 %v1578_v52, 0.0  ;;  %v3232_v52 = vld [vmem:[%s3355_s3 + $0x5] ss:$0 sm:$0xff] }
 0x484   : > { %v1692_v57 = vpack.c.bf16 %v1668_v54, %v1667_v53 }
 0x485   : > { %v1691_v58 = vpack.c.bf16 %v1666_v56, %v1665_v55  ;;  %v2545_v59 = vpop.f32.mrb[80].mxu0 }
 0x486   : > { %v1599_v60 = vadd.f32 %v2545_v59, %v3192_v1  ;;  %v1590_v61 = vpop.f32.mrb[81].mxu0 }
 0x487   : > { %v1591_v62 = vadd.f32 %v3192_v1, %v1590_v61  ;;  %v2546_v63 = vpop.f32.mrb[82].mxu0  ;;  %2587 = vmatprep.mubr.bf16.mxu1 %v1691_v58 }
 0x488   : > { %v1602_v0 = vadd.f32 %v2546_v63, %v3192_v1  ;;  %v1593_v13 = vpop.f32.mrb[83].mxu0  ;;  %2588 = vmatmul.mubr.bf16.gmra.mrb[72].mxu1 %v1692_v57  ;;  %v1671_v3 = vmax.f32 %v1599_v60, 0.0 }
 0x489   : > { %v1594_v2 = vadd.f32 %v3192_v1, %v1593_v13  ;;  %v1669_v5 = vmax.f32 %v1591_v62, 0.0 }
 0x48a   : > { %v1672_v4 = vmax.f32 %v1602_v0, 0.0 }
 0x48b   : > { %v1670_v6 = vmax.f32 %v1594_v2, 0.0 }
 0x48c   : > { %v1694_v7 = vpack.c.bf16 %v1672_v4, %v1671_v3 }
 0x48d   : > { %v1693_v8 = vpack.c.bf16 %v1670_v6, %v1669_v5  ;;  %v2549_v20 = vpop.f32.mrb[84].mxu0 }
 0x48e   : > { %v1615_v9 = vadd.f32 %v2549_v20, %v3192_v1  ;;  %v1606_v10 = vpop.f32.mrb[85].mxu0 }
 0x48f   : > { %v1607_v11 = vadd.f32 %v3192_v1, %v1606_v10  ;;  %v2550_v14 = vpop.f32.mrb[86].mxu0  ;;  %2591 = vmatprep.mubr.bf16.mxu1 %v1693_v8 }
 0x490   : > { %v1618_v26 = vadd.f32 %v2550_v14, %v3192_v1  ;;  %v1609_v15 = vpop.f32.mrb[87].mxu0  ;;  %2592 = vmatmul.mubr.bf16.gmra.mrb[76].mxu1 %v1694_v7  ;;  %v1675_v17 = vmax.f32 %v1615_v9, 0.0 }
 0x491   : > { %v1610_v16 = vadd.f32 %v3192_v1, %v1609_v15  ;;  %v1673_v19 = vmax.f32 %v1607_v11, 0.0 }
 0x492   : > { %v1676_v18 = vmax.f32 %v1618_v26, 0.0 }
 0x493   : > { %v1674_v33 = vmax.f32 %v1610_v16, 0.0 }
 0x494   : > { %v1696_v12 = vpack.c.bf16 %v1676_v18, %v1675_v17 }
 0x495   : > { %v1695_v21 = vpack.c.bf16 %v1674_v33, %v1673_v19  ;;  %v2553_v22 = vpop.f32.mrb[88].mxu0 }
 0x496   : > { %v1631_v23 = vadd.f32 %v2553_v22, %v3192_v1  ;;  %v1622_v24 = vpop.f32.mrb[89].mxu0 }
 0x497   : > { %v1623_v25 = vadd.f32 %v3192_v1, %v1622_v24  ;;  %v2554_v27 = vpop.f32.mrb[90].mxu0  ;;  %2595 = vmatprep.mubr.bf16.mxu1 %v1695_v21 }
 0x498   : > { %v1634_v28 = vadd.f32 %v2554_v27, %v3192_v1  ;;  %v1625_v29 = vpop.f32.mrb[91].mxu0  ;;  %2596 = vmatmul.mubr.bf16.gmra.mrb[80].mxu1 %v1696_v12  ;;  %v1679_v31 = vmax.f32 %v1631_v23, 0.0 }
 0x499   : > { %v1626_v30 = vadd.f32 %v3192_v1, %v1625_v29  ;;  %v1677_v34 = vmax.f32 %v1623_v25, 0.0 }
 0x49a   : > { %v1680_v32 = vmax.f32 %v1634_v28, 0.0 }
 0x49b   : > { %v1678_v35 = vmax.f32 %v1626_v30, 0.0 }
 0x49c   : > { %v1698_v36 = vpack.c.bf16 %v1680_v32, %v1679_v31 }
 0x49d   : > { %v1697_v37 = vpack.c.bf16 %v1678_v35, %v1677_v34  ;;  %v2557_v38 = vpop.f32.mrb[92].mxu0 }
 0x49e   : > { %v1647_v39 = vadd.f32 %v2557_v38, %v3192_v1  ;;  %v1638_v40 = vpop.f32.mrb[93].mxu0 }
 0x49f   : > { %v1639_v41 = vadd.f32 %v3192_v1, %v1638_v40  ;;  %v2558_v42 = vpop.f32.mrb[94].mxu0  ;;  %2599 = vmatprep.mubr.bf16.mxu1 %v1697_v37 }
 0x4a0   : > { %v1650_v43 = vadd.f32 %v2558_v42, %v3192_v1  ;;  %v1641_v44 = vpop.f32.mrb[95].mxu0  ;;  %2600 = vmatmul.mubr.bf16.gmra.mrb[84].mxu1 %v1698_v36  ;;  %v1683_v46 = vmax.f32 %v1647_v39, 0.0 }
 0x4a1   : > { %v1642_v45 = vadd.f32 %v3192_v1, %v1641_v44  ;;  %v1681_v48 = vmax.f32 %v1639_v41, 0.0 }
 0x4a2   : > { %v1684_v47 = vmax.f32 %v1650_v43, 0.0 }
 0x4a3   : > { %v1682_v49 = vmax.f32 %v1642_v45, 0.0 }
 0x4a4   : > { %v1700_v50 = vpack.c.bf16 %v1684_v47, %v1683_v46 }
 0x4a5   : > { %v1699_v51 = vpack.c.bf16 %v1682_v49, %v1681_v48 }
 0x4a7   : > { %2603 = vmatprep.mubr.bf16.mxu1 %v1699_v51 }
 0x4a8   : > { %2604 = vmatmul.mubr.bf16.gmra.mrb[88].mxu1 %v1700_v50 }
 0x543   : > { %v2577_v53 = vpop.f32.mrb[96].mxu0 }
 0x544   : > { %v1814_v54 = vadd.f32 %v2577_v53, %v3232_v52  ;;  %v1805_v1 = vpop.f32.mrb[97].mxu0 }
 0x545   : > { %v1806_v55 = vadd.f32 %v3232_v52, %v1805_v1  ;;  %v2578_v56 = vpop.f32.mrb[98].mxu0 }
 0x546   : > { %1934 = vst [vmem:[%s3236_s23 + $0x10] sm:$0xff] %v1814_v54  ;;  %v1817_v57 = vadd.f32 %v2578_v56, %v3232_v52  ;;  %v1808_v58 = vpop.f32.mrb[99].mxu0 }
 0x547   : > { %1932 = vst [vmem:[%s3236_s23] sm:$0xff] %v1806_v55  ;;  %v1809_v59 = vadd.f32 %v3232_v52, %v1808_v58 }
 0x548   : > { %1935 = vst [vmem:[%s3236_s23 + $0x18] sm:$0xff] %v1817_v57 }
 0x549   : > { %1933 = vst [vmem:[%s3236_s23 + $0x8] sm:$0xff] %v1809_v59 }
 0x54b   : > { %v2581_v60 = vpop.f32.mrb[64].mxu1 }
 0x54c   : > { %v1830_v61 = vadd.f32 %v2581_v60, %v3232_v52  ;;  %v1821_v62 = vpop.f32.mrb[65].mxu1 }
 0x54d   : > { %v1822_v63 = vadd.f32 %v3232_v52, %v1821_v62  ;;  %v2582_v0 = vpop.f32.mrb[66].mxu1 }
 0x54e   : > { %1938 = vst [vmem:[%s3236_s23 + $0x30] sm:$0xff] %v1830_v61  ;;  %v1833_v13 = vadd.f32 %v2582_v0, %v3232_v52  ;;  %v1824_v2 = vpop.f32.mrb[67].mxu1 }
 0x54f   : > { %1936 = vst [vmem:[%s3236_s23 + $0x20] sm:$0xff] %v1822_v63  ;;  %v1825_v3 = vadd.f32 %v3232_v52, %v1824_v2 }
 0x550   : > { %1939 = vst [vmem:[%s3236_s23 + $0x38] sm:$0xff] %v1833_v13 }
 0x551   : > { %1937 = vst [vmem:[%s3236_s23 + $0x28] sm:$0xff] %v1825_v3 }
 0x553   : > { %v2585_v4 = vpop.f32.mrb[68].mxu1 }
 0x554   : > { %v1846_v5 = vadd.f32 %v2585_v4, %v3232_v52  ;;  %v1837_v6 = vpop.f32.mrb[69].mxu1 }
 0x555   : > { %v1838_v7 = vadd.f32 %v3232_v52, %v1837_v6  ;;  %v2586_v8 = vpop.f32.mrb[70].mxu1 }
 0x556   : > { %1942 = vst [vmem:[%s3236_s23 + $0x50] sm:$0xff] %v1846_v5  ;;  %v1849_v20 = vadd.f32 %v2586_v8, %v3232_v52  ;;  %v1840_v9 = vpop.f32.mrb[71].mxu1 }
 0x557   : > { %1940 = vst [vmem:[%s3236_s23 + $0x40] sm:$0xff] %v1838_v7  ;;  %v1841_v10 = vadd.f32 %v3232_v52, %v1840_v9 }
 0x558   : > { %1943 = vst [vmem:[%s3236_s23 + $0x58] sm:$0xff] %v1849_v20 }
 0x559   : > { %1941 = vst [vmem:[%s3236_s23 + $0x48] sm:$0xff] %v1841_v10 }
 0x55b   : > { %v2589_v11 = vpop.f32.mrb[72].mxu1 }
 0x55c   : > { %v1862_v14 = vadd.f32 %v2589_v11, %v3232_v52  ;;  %v1853_v26 = vpop.f32.mrb[73].mxu1 }
 0x55d   : > { %v1854_v15 = vadd.f32 %v3232_v52, %v1853_v26  ;;  %v2590_v16 = vpop.f32.mrb[74].mxu1 }
 0x55e   : > { %1946 = vst [vmem:[%s3236_s23 + $0x70] sm:$0xff] %v1862_v14  ;;  %v1865_v17 = vadd.f32 %v2590_v16, %v3232_v52  ;;  %v1856_v18 = vpop.f32.mrb[75].mxu1 }
 0x55f   : > { %1944 = vst [vmem:[%s3236_s23 + $0x60] sm:$0xff] %v1854_v15  ;;  %v1857_v19 = vadd.f32 %v3232_v52, %v1856_v18 }
 0x560   : > { %1947 = vst [vmem:[%s3236_s23 + $0x78] sm:$0xff] %v1865_v17 }
 0x561   : > { %1945 = vst [vmem:[%s3236_s23 + $0x68] sm:$0xff] %v1857_v19 }
 0x563   : > { %v2593_v33 = vpop.f32.mrb[76].mxu1 }
 0x564   : > { %v1878_v12 = vadd.f32 %v2593_v33, %v3232_v52  ;;  %v1869_v21 = vpop.f32.mrb[77].mxu1 }
 0x565   : > { %v1870_v22 = vadd.f32 %v3232_v52, %v1869_v21  ;;  %v2594_v23 = vpop.f32.mrb[78].mxu1 }
 0x566   : > { %1950 = vst [vmem:[%s3236_s23 + $0x90] sm:$0xff] %v1878_v12  ;;  %v1881_v24 = vadd.f32 %v2594_v23, %v3232_v52  ;;  %v1872_v25 = vpop.f32.mrb[79].mxu1 }
 0x567   : > { %1948 = vst [vmem:[%s3236_s23 + $0x80] sm:$0xff] %v1870_v22  ;;  %v1873_v27 = vadd.f32 %v3232_v52, %v1872_v25 }
 0x568   : > { %1951 = vst [vmem:[%s3236_s23 + $0x98] sm:$0xff] %v1881_v24 }
 0x569   : > { %1949 = vst [vmem:[%s3236_s23 + $0x88] sm:$0xff] %v1873_v27 }
 0x56b   : > { %v2597_v28 = vpop.f32.mrb[80].mxu1 }
 0x56c   : > { %v1894_v29 = vadd.f32 %v2597_v28, %v3232_v52  ;;  %v1885_v30 = vpop.f32.mrb[81].mxu1 }
 0x56d   : > { %v1886_v31 = vadd.f32 %v3232_v52, %v1885_v30  ;;  %v2598_v32 = vpop.f32.mrb[82].mxu1 }
 0x56e   : > { %1954 = vst [vmem:[%s3236_s23 + $0xb0] sm:$0xff] %v1894_v29  ;;  %v1897_v34 = vadd.f32 %v2598_v32, %v3232_v52  ;;  %v1888_v35 = vpop.f32.mrb[83].mxu1 }
 0x56f   : > { %1952 = vst [vmem:[%s3236_s23 + $0xa0] sm:$0xff] %v1886_v31  ;;  %v1889_v36 = vadd.f32 %v3232_v52, %v1888_v35 }
 0x570   : > { %1955 = vst [vmem:[%s3236_s23 + $0xb8] sm:$0xff] %v1897_v34 }
 0x571   : > { %1953 = vst [vmem:[%s3236_s23 + $0xa8] sm:$0xff] %v1889_v36 }
 0x573   : > { %v2601_v37 = vpop.f32.mrb[84].mxu1 }
 0x574   : > { %v1910_v38 = vadd.f32 %v2601_v37, %v3232_v52  ;;  %v1901_v39 = vpop.f32.mrb[85].mxu1 }
 0x575   : > { %v1902_v40 = vadd.f32 %v3232_v52, %v1901_v39  ;;  %v2602_v41 = vpop.f32.mrb[86].mxu1 }
 0x576   : > { %1958 = vst [vmem:[%s3236_s23 + $0xd0] sm:$0xff] %v1910_v38  ;;  %v1913_v42 = vadd.f32 %v2602_v41, %v3232_v52  ;;  %v1904_v43 = vpop.f32.mrb[87].mxu1 }
 0x577   : > { %1956 = vst [vmem:[%s3236_s23 + $0xc0] sm:$0xff] %v1902_v40  ;;  %v1905_v44 = vadd.f32 %v3232_v52, %v1904_v43 }
 0x578   : > { %1959 = vst [vmem:[%s3236_s23 + $0xd8] sm:$0xff] %v1913_v42 }
 0x579   : > { %1957 = vst [vmem:[%s3236_s23 + $0xc8] sm:$0xff] %v1905_v44 }
 0x57b   : > { %v2605_v45 = vpop.f32.mrb[88].mxu1 }
 0x57c   : > { %v1926_v46 = vadd.f32 %v2605_v45, %v3232_v52  ;;  %v1917_v47 = vpop.f32.mrb[89].mxu1 }
 0x57d   : > { %v1918_v48 = vadd.f32 %v3232_v52, %v1917_v47  ;;  %v2606_v49 = vpop.f32.mrb[90].mxu1 }
 0x57e   : > { %1962 = vst [vmem:[%s3236_s23 + $0xf0] sm:$0xff] %v1926_v46  ;;  %v1929_v50 = vadd.f32 %v2606_v49, %v3232_v52  ;;  %v1920_v51 = vpop.f32.mrb[91].mxu1 }
 0x57f   : > { %1960 = vst [vmem:[%s3236_s23 + $0xe0] sm:$0xff] %v1918_v48  ;;  %v1921_v53 = vadd.f32 %v3232_v52, %v1920_v51 }
 0x580   : > { %1963 = vst [vmem:[%s3236_s23 + $0xf8] sm:$0xff] %v1929_v50 }
 0x581   : > { %1961 = vst [vmem:[%s3236_s23 + $0xe8] sm:$0xff] %v1921_v53 }
 0x582   : > { %2735 = shalt.err (!%p2732_p3)
}
 0x583   : > { %s2736_s10 = scalar_lea.hbm %s3301_s5, 4096  ;;  %s2740_s13 = scalar_lea.hbm %s3356_s4, 16384 }
 0x584   : > { %p2737_p4 = scmp.ne.s32.totalorder %s3301_s5, %s2736_s10  ;;  %p2741_p9 = scmp.lt.u32.totalorder %s3301_s5, %s3356_s4 }
 0x585   : > { %p2742_p10 = scmp.lt.u32.totalorder %s2740_s13, %s2736_s10  ;;  %p2744_p12 = scmp.lt.u32.totalorder %s2736_s10, %s3301_s5 }
 0x586   : > { %p2738_p7 = pnand %p2737_p4, %p2852_p5 }
 0x587   : > { %p2743_p11 = por %p2742_p10, %p2741_p9 }
 0x588   : > { %p2739_p8 = pneg %p2738_p7 }
 0x589   : > { %p2745_p13 = por %p2744_p12, %p2743_p11 }
 0x58b   : > { %p2746_p0 = pnand %p2745_p13, %p2739_p8 }
 0x58d   : > { %2749 = shalt.err (!%p2746_p0)
}
 0x58e   : > { %s2787_s22 = smov 128   ;;  %s2788_s23 = smov 8  }
 0x58f   : > { %2624 = dma.vmem_to_hbm [thread:$0]  (%p2852_p5), %s3303_s28, 4096, %s3301_s5, %s3311_s19, %s2787_s22, %s2787_s22, %s2788_s23  }
 0x590 PF: > { %p2630_p1 = scmp.ge.s32.totalorder %s2784_s18, 2  ;;  %s1993_s27 = sand.u32 1, %s2772_s15  }
 0x591   : > { %s1994_s29 = scalar_lea.sflag [#allocation3], %s1993_s27 }
 0x592   : > { %p2627_p2 = pnand %p2630_p1, %p2856_p6 }
 0x594   : > { %2767 = dma.done.wait (!%p2627_p2), %s1994_s29, 4096  }
 0x595   : > { %2769 = vsyncadd (!%p2627_p2), %s1994_s29, 4294963200  ;;  %p14_p3 = scmp.ge.s32.totalorder %s2839_s21, 6   ;;  %s3359_s15 = smov %s2776_s16 }
 0x596   : > { %s3360_s16 = smov %s2780_s17  ;;  %s3361_s17 = smov %s2850_s24 }
 0x597   : > { %s3362_s18 = smov %s2839_s21  ;;  %16 = sbr.rel (!%p14_p3) target bundleno = 3 (0x3), region = 75 }
 0x59e   :  { %1999 = vsyncpa [#allocation3], 1 }
 0x59f   :  { %2001 = vsyncpa [#allocation3 + $0x1], 1 }

</bundles_post_ra>
